<compile_context>
chip_gen: v7x
topology: tpu7x:2x2x1
jax: 0.10.0
libtpu: 0.0.40
codegen_flags: <defaults>
</compile_context>

<pallas_src>
import functools
import math

import jax
import jax.numpy as jnp
from jax import lax
from jax.experimental import pallas as pl
from jax.experimental.pallas import tpu as pltpu


def _ec_moe_gate_kernel(h_ref, w_ref, idx_ref, val_ref, acc_ref, *,
                        capacity, idx_bits, S, E):
    """Grid = (batch, k-tile).

    h_ref  : (S, block_k)   VMEM (batch dim squeezed by BlockSpec)
    w_ref  : (E, block_k)   VMEM
    idx_ref: (E, C)         int32 out          (written at last k step)
    val_ref: (E, C)         hidden-dtype out   (written at last k step)
    acc_ref: (E, S)         f32 VMEM scratch logits accumulator
    """
    k = pl.program_id(1)
    nk = pl.num_programs(1)

    @pl.when(k == 0)
    def _():
        acc_ref[...] = jnp.zeros_like(acc_ref)

    # Expert-major logits: (E, S) += (E, bk) . (S, bk)^T, f32 MXU accumulation.
    acc_ref[...] += lax.dot_general(
        w_ref[...], h_ref[...],
        dimension_numbers=(((1,), (1,)), ((), ())),
        preferred_element_type=jnp.float32,
    )

    @pl.when(k == nk - 1)
    def _():
        logits = acc_ref[...]                                  # (E, S) f32

        # Softmax over experts (sublane axis 0); tokens stay on the 128 lanes.
        m = jnp.max(logits, axis=0, keepdims=True)             # (1, S)
        e = jnp.exp(logits - m)                                 # (E, S)
        denom = jnp.sum(e, axis=0, keepdims=True)               # (1, S)
        inv = pl.reciprocal(denom, approx=True)                  # EUP slot
        inv = inv * (2.0 - denom * inv)                          # one Newton step
        scores = e * inv                                         # (E, S) f32, in (0, 1]

        # Packed sort key: high bits = score's f32 bit pattern (order-preserving for
        # finite scores >= 0), low idx_bits = (S-1-token) so the lower token index
        # wins exact ties (torch.topk tie-break).  Keys are unique per row.
        lo_mask = (1 << idx_bits) - 1
        col = lax.broadcasted_iota(jnp.int32, (E, S), 1)
        keys = (pltpu.bitcast(scores, jnp.int32) & ~lo_mask) | (S - 1 - col)

        neg = jnp.int32(jnp.iinfo(jnp.int32).min)
        out_cols = lax.broadcasted_iota(jnp.int32, (E, capacity), 1)
        idx_acc = jnp.zeros((E, capacity), jnp.int32)
        val_acc = jnp.zeros((E, capacity), jnp.float32)

        def select_one(c, carry):
            keys, idx_acc, val_acc = carry
            best = jnp.max(keys, axis=-1, keepdims=True)         # (E, 1) cross-lane max
            is_best = keys == best                                # exactly one True/row
            # Exact score at the winning token (packed key used only for ordering).
            exact = jnp.max(jnp.where(is_best, scores, -1.0), axis=-1, keepdims=True)
            tok = (S - 1) - (best & lo_mask)                      # decoded token index
            sel = out_cols == c
            idx_acc = jnp.where(sel, tok, idx_acc)                # accumulate in regs
            val_acc = jnp.where(sel, exact, val_acc)
            keys = jnp.where(is_best, neg, keys)                  # knock out the winner
            return keys, idx_acc, val_acc

        if capacity <= 32:
            # Small C: full static unroll for LLO scheduling visibility.
            carry = (keys, idx_acc, val_acc)
            for c in range(capacity):
                carry = select_one(c, carry)
            keys, idx_acc, val_acc = carry
        else:
            # Larger C: partially unrolled loop to bound compile time / live ranges.
            keys, idx_acc, val_acc = lax.fori_loop(
                0, capacity, select_one, (keys, idx_acc, val_acc), unroll=8)

        # One dense store per output per batch element.
        # NOTE: with capacity < 128 these are lane-masked stores; flattening to a
        # lane-dense (1, E*C) slab needs an in-kernel sublane->lane relayout whose
        # cost/benefit is negligible at this output size, so the module's native
        # (E, C) layout is kept.
        idx_ref[...] = idx_acc
        val_ref[...] = val_acc.astype(val_ref.dtype)


def _choose_block_k(S, d, E, itemsize, budget_bytes):
    """Largest contraction tile (full d, or a lane-aligned divisor of d) whose
    double-buffered input blocks + f32 accumulator fit the VMEM budget."""
    acc_bytes = E * S * 4

    def fits(bk):
        return 2 * (S + E) * bk * itemsize + acc_bytes <= budget_bytes

    if fits(d):
        return d                                   # no K-tiling needed
    bk = (d // 128) * 128
    while bk >= 128:
        if d % bk == 0 and fits(bk):
            return bk
        bk -= 128
    for bk in range(128, d, 128):                  # smallest lane-aligned divisor
        if d % bk == 0:
            return bk
    return d                                       # d not tileable on lane granularity


def ec_moe_gate(hidden_states, weight, f_c=2.0, *, vmem_budget_bytes=40 * 1024 * 1024):
    """Expert-choice gate.

    hidden_states: (B, S, d); weight: (E, d).
    Returns (topk_idx int32 (B,E,C), topk_weight hidden dtype (B,E,C)).
    `vmem_budget_bytes` defaults to a v7x-safe block budget; raise on v5e/v6e
    (128 MiB physical VMEM) for larger contraction tiles.
    """
    B, S, d = hidden_states.shape
    E, d_w = weight.shape
    assert d_w == d
    capacity = int(S * f_c / E)
    assert 1 <= capacity <= S, "expert capacity must satisfy 1 <= C <= S"

    # Bits needed to encode a token index inside the packed sort key.
    idx_bits = max(1, (S - 1).bit_length())
    assert idx_bits <= 16, "S too large for the packed value/index sort key"

    itemsize = jnp.dtype(hidden_states.dtype).itemsize
    block_k = _choose_block_k(S, d, E, itemsize, vmem_budget_bytes)
    nk = pl.cdiv(d, block_k)

    # Scoped-VMEM limit: cover the blocks + accumulator + outputs with slack, but
    # never exceed a v7x-safe ceiling (~48 MiB of 64 MiB physical).
    footprint = (2 * (S + E) * block_k * itemsize          # double-buffered in blocks
                 + E * S * 4                               # f32 accumulator scratch
                 + 2 * 2 * E * capacity * 4                # double-buffered outputs
                 + (4 << 20))                              # slack
    vmem_limit = max(32 << 20, min(footprint, 48 << 20))

    kernel = functools.partial(_ec_moe_gate_kernel,
                               capacity=capacity, idx_bits=idx_bits, S=S, E=E)

    out_shapes = (
        jax.ShapeDtypeStruct((B, E, capacity), jnp.int32),
        jax.ShapeDtypeStruct((B, E, capacity), hidden_states.dtype),
    )

    return pl.pallas_call(
        kernel,
        out_shape=out_shapes,
        grid_spec=pltpu.PrefetchScalarGridSpec(
            num_scalar_prefetch=0,
            grid=(B, nk),
            in_specs=[
                pl.BlockSpec((None, S, block_k), lambda b, k: (b, 0, k)),  # h (batch squeezed)
                pl.BlockSpec((E, block_k), lambda b, k: (0, k)),           # gate weight slice
            ],
            out_specs=[
                pl.BlockSpec((None, E, capacity), lambda b, k: (b, 0, 0)),
                pl.BlockSpec((None, E, capacity), lambda b, k: (b, 0, 0)),
            ],
            scratch_shapes=[pltpu.VMEM((E, S), jnp.float32)],              # logits accumulator
        ),
        compiler_params=pltpu.CompilerParams(
            dimension_semantics=("parallel", "arbitrary"),
            vmem_limit_bytes=int(vmem_limit),
        ),
    )(hidden_states, weight)


if __name__ == "__main__":
    # Small shapes consistent with the module: B=2, S=64, d=32, E=8, f_c=2.0 -> C=16
    B, S, d = 2, 64, 32
    E, f_c = 8, 2.0
    capacity = int(S * f_c / E)

    key = jax.random.PRNGKey(0)
    k_x, k_w = jax.random.split(key)

    hidden = jax.random.normal(k_x, (B, S, d), dtype=jnp.float32)
    # kaiming_uniform_(a=sqrt(5)) on an (E, d) weight => U(-1/sqrt(d), 1/sqrt(d))
    bound = 1.0 / math.sqrt(d)
    weight = jax.random.uniform(k_w, (E, d), dtype=jnp.float32,
                                minval=-bound, maxval=bound)

    topk_idx, topk_weight = ec_moe_gate(hidden, weight, f_c=f_c)
    jax.block_until_ready((topk_idx, topk_weight))

    # Reference expert-major softmax scores (B, E, S) in plain JAX.
    logits = jnp.einsum("bsd,ed->bse", hidden.astype(jnp.float32),
                        weight.astype(jnp.float32))
    ref_scores = jnp.transpose(jax.nn.softmax(logits, axis=-1), (0, 2, 1))

    assert topk_idx.shape == (B, E, capacity)
    assert topk_weight.shape == (B, E, capacity)
    assert topk_idx.dtype == jnp.int32
    assert topk_weight.dtype == hidden.dtype

    # torch.topk(..., sorted=False) contract: each expert selects its top-C tokens.
    # (1) returned weights equal the softmax score at the returned token index.
    gathered = jnp.take_along_axis(ref_scores, topk_idx, axis=-1)
    assert bool(jnp.allclose(topk_weight.astype(jnp.float32), gathered,
                             atol=1e-5, rtol=1e-4))
    # (2) the C selected tokens per (batch, expert) are distinct and in range.
    sorted_idx = jnp.sort(topk_idx, axis=-1)
    assert bool(jnp.all(sorted_idx[..., 1:] > sorted_idx[..., :-1]))
    assert bool(jnp.all((topk_idx >= 0) & (topk_idx < S)))
    # (3) every selected token's score is >= the C-th largest score for that expert.
    kth = jnp.sort(ref_scores, axis=-1)[..., S - capacity]            # (B, E)
    assert bool(jnp.all(gathered >= kth[..., None] - 1e-5))

    print("KERNEL_OK")
</pallas_src>

<mosaic_0001>
module attributes {stable_mosaic.version = 11 : i64} {
  func.func @_ec_moe_gate_kernel(%arg0: i32, %arg1: i32, %arg2: memref<1x64x32xf32, #tpu.memory_space<vmem>>, %arg3: memref<8x32xf32, #tpu.memory_space<vmem>>, %arg4: memref<1x8x16xi32, #tpu.memory_space<vmem>>, %arg5: memref<1x8x16xf32, #tpu.memory_space<vmem>>, %arg6: memref<8x64xf32, #tpu.memory_space<vmem>>) attributes {dimension_semantics = [#tpu.dimension_semantics<parallel>, #tpu.dimension_semantics<arbitrary>], iteration_bounds = array<i64: 2, 1>, scalar_prefetch = 0 : i64, scratch_operands = 1 : i64, tpu.core_type = #tpu.core_type<tc>, window_params = [{transform_indices = @transform_0, window_bounds = array<i64: 1, 64, 32>}, {transform_indices = @transform_1, window_bounds = array<i64: 8, 32>}, {transform_indices = @transform_2, window_bounds = array<i64: 1, 8, 16>}, {transform_indices = @transform_3, window_bounds = array<i64: 1, 8, 16>}]} {
    %c0_i32 = arith.constant 0 : i32
    %0 = arith.cmpi eq, %arg1, %c0_i32 : i32
    %1 = arith.extui %0 : i1 to i32
    %c0_i32_0 = arith.constant 0 : i32
    %2 = arith.cmpi ne, %1, %c0_i32_0 : i32
    scf.if %2 {
      %cst_11 = arith.constant 0.000000e+00 : f32
      %13 = vector.broadcast %cst_11 : f32 to vector<8x64xf32>
      %c0_12 = arith.constant 0 : index
      %c0_13 = arith.constant 0 : index
      %14 = vector.load %arg6[%c0_12, %c0_13] : memref<8x64xf32, #tpu.memory_space<vmem>>, vector<8x64xf32>
      tpu.vector_store %arg6[%c0_12, %c0_13], %13 {strides = array<i32>} : memref<8x64xf32, #tpu.memory_space<vmem>>, vector<8x64xf32>,
    } else {
    }
    %c0 = arith.constant 0 : index
    %c0_1 = arith.constant 0 : index
    %3 = vector.load %arg6[%c0, %c0_1] : memref<8x64xf32, #tpu.memory_space<vmem>>, vector<8x64xf32>
    %c0_2 = arith.constant 0 : index
    %c0_3 = arith.constant 0 : index
    %4 = vector.load %arg3[%c0_2, %c0_3] : memref<8x32xf32, #tpu.memory_space<vmem>>, vector<8x32xf32>
    %c0_4 = arith.constant 0 : index
    %c0_5 = arith.constant 0 : index
    %c0_6 = arith.constant 0 : index
    %5 = vector.load %arg2[%c0_4, %c0_5, %c0_6] : memref<1x64x32xf32, #tpu.memory_space<vmem>>, vector<1x64x32xf32>
    %6 = vector.shape_cast %5 : vector<1x64x32xf32> to vector<64x32xf32>
    %cst = arith.constant dense<0.000000e+00> : vector<8x64xf32>
    %7 = tpu.matmul %4, %6, %cst {dimension_numbers = #tpu.dot_dimension_numbers<[1], [1], [0], [0], [0, 0, 1, 0], [], []>} : vector<8x32xf32>, vector<64x32xf32>, vector<8x64xf32> -> vector<8x64xf32>
    %8 = arith.addf %3, %7 : vector<8x64xf32>
    %c0_7 = arith.constant 0 : index
    %c0_8 = arith.constant 0 : index
    %9 = vector.load %arg6[%c0_7, %c0_8] : memref<8x64xf32, #tpu.memory_space<vmem>>, vector<8x64xf32>
    tpu.vector_store %arg6[%c0_7, %c0_8], %8 {strides = array<i32>} : memref<8x64xf32, #tpu.memory_space<vmem>>, vector<8x64xf32>,
    %c0_i32_9 = arith.constant 0 : i32
    %10 = arith.cmpi eq, %arg1, %c0_i32_9 : i32
    %11 = arith.extui %10 : i1 to i32
    %c0_i32_10 = arith.constant 0 : i32
    %12 = arith.cmpi ne, %11, %c0_i32_10 : i32
    scf.if %12 {
      %c0_11 = arith.constant 0 : index
      %c0_12 = arith.constant 0 : index
      %13 = vector.load %arg6[%c0_11, %c0_12] : memref<8x64xf32, #tpu.memory_space<vmem>>, vector<8x64xf32>
      %cst_13 = arith.constant dense<0xFF800000> : vector<64xf32>
      %14 = vector.multi_reduction <maximumf>, %13, %cst_13 [0] : vector<8x64xf32> to vector<64xf32>
      %15 = vector.shape_cast %14 : vector<64xf32> to vector<1x64xf32>
      %16 = vector.broadcast %15 : vector<1x64xf32> to vector<8x64xf32>
      %17 = arith.subf %13, %16 : vector<8x64xf32>
      %18 = math.exp %17 : vector<8x64xf32>
      %cst_14 = arith.constant dense<0.000000e+00> : vector<64xf32>
      %19 = vector.multi_reduction <add>, %18, %cst_14 [0] : vector<8x64xf32> to vector<64xf32>
      %20 = vector.shape_cast %19 : vector<64xf32> to vector<1x64xf32>
      %21 = tpu.reciprocal %20 {approx = true} : vector<1x64xf32> -> vector<1x64xf32>
      %22 = arith.mulf %20, %21 : vector<1x64xf32>
      %cst_15 = arith.constant 2.000000e+00 : f32
      %23 = vector.broadcast %cst_15 : f32 to vector<1x64xf32>
      %24 = arith.subf %23, %22 : vector<1x64xf32>
      %25 = arith.mulf %21, %24 : vector<1x64xf32>
      %26 = vector.broadcast %25 : vector<1x64xf32> to vector<8x64xf32>
      %27 = arith.mulf %18, %26 : vector<8x64xf32>
      %28 = tpu.iota {dimensions = array<i32: 1>} : vector<8x64xi32>
      %29 = tpu.bitcast %27 : vector<8x64xf32> -> vector<8x64xi32>
      %c-64_i32 = arith.constant -64 : i32
      %30 = vector.broadcast %c-64_i32 : i32 to vector<8x64xi32>
      %31 = arith.andi %29, %30 : vector<8x64xi32>
      %c63_i32 = arith.constant 63 : i32
      %32 = vector.broadcast %c63_i32 : i32 to vector<8x64xi32>
      %33 = arith.subi %32, %28 : vector<8x64xi32>
      %34 = arith.ori %31, %33 : vector<8x64xi32>
      %35 = tpu.iota {dimensions = array<i32: 1>} : vector<8x16xi32>
      %c0_i32_16 = arith.constant 0 : i32
      %36 = vector.broadcast %c0_i32_16 : i32 to vector<8x16xi32>
      %cst_17 = arith.constant 0.000000e+00 : f32
      %37 = vector.broadcast %cst_17 : f32 to vector<8x16xf32>
      %cst_18 = arith.constant dense<-2147483648> : vector<8xi32>
      %38 = vector.multi_reduction <maxsi>, %34, %cst_18 [1] : vector<8x64xi32> to vector<8xi32>
      %39 = vector.shape_cast %38 : vector<8xi32> to vector<8x1xi32>
      %40 = vector.broadcast %39 : vector<8x1xi32> to vector<8x64xi32>
      %41 = arith.cmpi eq, %34, %40 : vector<8x64xi32>
      %cst_19 = arith.constant -1.000000e+00 : f32
      %42 = vector.broadcast %cst_19 : f32 to vector<8x64xf32>
      %43 = arith.select %41, %27, %42 : vector<8x64xi1>, vector<8x64xf32>
      %cst_20 = arith.constant dense<0xFF800000> : vector<8xf32>
      %44 = vector.multi_reduction <maximumf>, %43, %cst_20 [1] : vector<8x64xf32> to vector<8xf32>
      %45 = vector.shape_cast %44 : vector<8xf32> to vector<8x1xf32>
      %c63_i32_21 = arith.constant 63 : i32
      %46 = vector.broadcast %c63_i32_21 : i32 to vector<8x1xi32>
      %47 = arith.andi %39, %46 : vector<8x1xi32>
      %c63_i32_22 = arith.constant 63 : i32
      %48 = vector.broadcast %c63_i32_22 : i32 to vector<8x1xi32>
      %49 = arith.subi %48, %47 : vector<8x1xi32>
      %c0_i32_23 = arith.constant 0 : i32
      %50 = vector.broadcast %c0_i32_23 : i32 to vector<8x16xi32>
      %51 = arith.cmpi eq, %35, %50 : vector<8x16xi32>
      %52 = vector.shape_cast %49 : vector<8x1xi32> to vector<8x1xi32>
      %53 = vector.broadcast %52 : vector<8x1xi32> to vector<8x16xi32>
      %54 = arith.select %51, %53, %36 : vector<8x16xi1>, vector<8x16xi32>
      %55 = vector.shape_cast %45 : vector<8x1xf32> to vector<8x1xf32>
      %56 = vector.broadcast %55 : vector<8x1xf32> to vector<8x16xf32>
      %57 = arith.select %51, %56, %37 : vector<8x16xi1>, vector<8x16xf32>
      %c-2147483648_i32 = arith.constant -2147483648 : i32
      %58 = vector.broadcast %c-2147483648_i32 : i32 to vector<8x64xi32>
      %59 = arith.select %41, %58, %34 : vector<8x64xi1>, vector<8x64xi32>
      %cst_24 = arith.constant dense<-2147483648> : vector<8xi32>
      %60 = vector.multi_reduction <maxsi>, %59, %cst_24 [1] : vector<8x64xi32> to vector<8xi32>
      %61 = vector.shape_cast %60 : vector<8xi32> to vector<8x1xi32>
      %62 = vector.broadcast %61 : vector<8x1xi32> to vector<8x64xi32>
      %63 = arith.cmpi eq, %59, %62 : vector<8x64xi32>
      %cst_25 = arith.constant -1.000000e+00 : f32
      %64 = vector.broadcast %cst_25 : f32 to vector<8x64xf32>
      %65 = arith.select %63, %27, %64 : vector<8x64xi1>, vector<8x64xf32>
      %cst_26 = arith.constant dense<0xFF800000> : vector<8xf32>
      %66 = vector.multi_reduction <maximumf>, %65, %cst_26 [1] : vector<8x64xf32> to vector<8xf32>
      %67 = vector.shape_cast %66 : vector<8xf32> to vector<8x1xf32>
      %c63_i32_27 = arith.constant 63 : i32
      %68 = vector.broadcast %c63_i32_27 : i32 to vector<8x1xi32>
      %69 = arith.andi %61, %68 : vector<8x1xi32>
      %c63_i32_28 = arith.constant 63 : i32
      %70 = vector.broadcast %c63_i32_28 : i32 to vector<8x1xi32>
      %71 = arith.subi %70, %69 : vector<8x1xi32>
      %c1_i32 = arith.constant 1 : i32
      %72 = vector.broadcast %c1_i32 : i32 to vector<8x16xi32>
      %73 = arith.cmpi eq, %35, %72 : vector<8x16xi32>
      %74 = vector.shape_cast %71 : vector<8x1xi32> to vector<8x1xi32>
      %75 = vector.broadcast %74 : vector<8x1xi32> to vector<8x16xi32>
      %76 = arith.select %73, %75, %54 : vector<8x16xi1>, vector<8x16xi32>
      %77 = vector.shape_cast %67 : vector<8x1xf32> to vector<8x1xf32>
      %78 = vector.broadcast %77 : vector<8x1xf32> to vector<8x16xf32>
      %79 = arith.select %73, %78, %57 : vector<8x16xi1>, vector<8x16xf32>
      %c-2147483648_i32_29 = arith.constant -2147483648 : i32
      %80 = vector.broadcast %c-2147483648_i32_29 : i32 to vector<8x64xi32>
      %81 = arith.select %63, %80, %59 : vector<8x64xi1>, vector<8x64xi32>
      %cst_30 = arith.constant dense<-2147483648> : vector<8xi32>
      %82 = vector.multi_reduction <maxsi>, %81, %cst_30 [1] : vector<8x64xi32> to vector<8xi32>
      %83 = vector.shape_cast %82 : vector<8xi32> to vector<8x1xi32>
      %84 = vector.broadcast %83 : vector<8x1xi32> to vector<8x64xi32>
      %85 = arith.cmpi eq, %81, %84 : vector<8x64xi32>
      %cst_31 = arith.constant -1.000000e+00 : f32
      %86 = vector.broadcast %cst_31 : f32 to vector<8x64xf32>
      %87 = arith.select %85, %27, %86 : vector<8x64xi1>, vector<8x64xf32>
      %cst_32 = arith.constant dense<0xFF800000> : vector<8xf32>
      %88 = vector.multi_reduction <maximumf>, %87, %cst_32 [1] : vector<8x64xf32> to vector<8xf32>
      %89 = vector.shape_cast %88 : vector<8xf32> to vector<8x1xf32>
      %c63_i32_33 = arith.constant 63 : i32
      %90 = vector.broadcast %c63_i32_33 : i32 to vector<8x1xi32>
      %91 = arith.andi %83, %90 : vector<8x1xi32>
      %c63_i32_34 = arith.constant 63 : i32
      %92 = vector.broadcast %c63_i32_34 : i32 to vector<8x1xi32>
      %93 = arith.subi %92, %91 : vector<8x1xi32>
      %c2_i32 = arith.constant 2 : i32
      %94 = vector.broadcast %c2_i32 : i32 to vector<8x16xi32>
      %95 = arith.cmpi eq, %35, %94 : vector<8x16xi32>
      %96 = vector.shape_cast %93 : vector<8x1xi32> to vector<8x1xi32>
      %97 = vector.broadcast %96 : vector<8x1xi32> to vector<8x16xi32>
      %98 = arith.select %95, %97, %76 : vector<8x16xi1>, vector<8x16xi32>
      %99 = vector.shape_cast %89 : vector<8x1xf32> to vector<8x1xf32>
      %100 = vector.broadcast %99 : vector<8x1xf32> to vector<8x16xf32>
      %101 = arith.select %95, %100, %79 : vector<8x16xi1>, vector<8x16xf32>
      %c-2147483648_i32_35 = arith.constant -2147483648 : i32
      %102 = vector.broadcast %c-2147483648_i32_35 : i32 to vector<8x64xi32>
      %103 = arith.select %85, %102, %81 : vector<8x64xi1>, vector<8x64xi32>
      %cst_36 = arith.constant dense<-2147483648> : vector<8xi32>
      %104 = vector.multi_reduction <maxsi>, %103, %cst_36 [1] : vector<8x64xi32> to vector<8xi32>
      %105 = vector.shape_cast %104 : vector<8xi32> to vector<8x1xi32>
      %106 = vector.broadcast %105 : vector<8x1xi32> to vector<8x64xi32>
      %107 = arith.cmpi eq, %103, %106 : vector<8x64xi32>
      %cst_37 = arith.constant -1.000000e+00 : f32
      %108 = vector.broadcast %cst_37 : f32 to vector<8x64xf32>
      %109 = arith.select %107, %27, %108 : vector<8x64xi1>, vector<8x64xf32>
      %cst_38 = arith.constant dense<0xFF800000> : vector<8xf32>
      %110 = vector.multi_reduction <maximumf>, %109, %cst_38 [1] : vector<8x64xf32> to vector<8xf32>
      %111 = vector.shape_cast %110 : vector<8xf32> to vector<8x1xf32>
      %c63_i32_39 = arith.constant 63 : i32
      %112 = vector.broadcast %c63_i32_39 : i32 to vector<8x1xi32>
      %113 = arith.andi %105, %112 : vector<8x1xi32>
      %c63_i32_40 = arith.constant 63 : i32
      %114 = vector.broadcast %c63_i32_40 : i32 to vector<8x1xi32>
      %115 = arith.subi %114, %113 : vector<8x1xi32>
      %c3_i32 = arith.constant 3 : i32
      %116 = vector.broadcast %c3_i32 : i32 to vector<8x16xi32>
      %117 = arith.cmpi eq, %35, %116 : vector<8x16xi32>
      %118 = vector.shape_cast %115 : vector<8x1xi32> to vector<8x1xi32>
      %119 = vector.broadcast %118 : vector<8x1xi32> to vector<8x16xi32>
      %120 = arith.select %117, %119, %98 : vector<8x16xi1>, vector<8x16xi32>
      %121 = vector.shape_cast %111 : vector<8x1xf32> to vector<8x1xf32>
      %122 = vector.broadcast %121 : vector<8x1xf32> to vector<8x16xf32>
      %123 = arith.select %117, %122, %101 : vector<8x16xi1>, vector<8x16xf32>
      %c-2147483648_i32_41 = arith.constant -2147483648 : i32
      %124 = vector.broadcast %c-2147483648_i32_41 : i32 to vector<8x64xi32>
      %125 = arith.select %107, %124, %103 : vector<8x64xi1>, vector<8x64xi32>
      %cst_42 = arith.constant dense<-2147483648> : vector<8xi32>
      %126 = vector.multi_reduction <maxsi>, %125, %cst_42 [1] : vector<8x64xi32> to vector<8xi32>
      %127 = vector.shape_cast %126 : vector<8xi32> to vector<8x1xi32>
      %128 = vector.broadcast %127 : vector<8x1xi32> to vector<8x64xi32>
      %129 = arith.cmpi eq, %125, %128 : vector<8x64xi32>
      %cst_43 = arith.constant -1.000000e+00 : f32
      %130 = vector.broadcast %cst_43 : f32 to vector<8x64xf32>
      %131 = arith.select %129, %27, %130 : vector<8x64xi1>, vector<8x64xf32>
      %cst_44 = arith.constant dense<0xFF800000> : vector<8xf32>
      %132 = vector.multi_reduction <maximumf>, %131, %cst_44 [1] : vector<8x64xf32> to vector<8xf32>
      %133 = vector.shape_cast %132 : vector<8xf32> to vector<8x1xf32>
      %c63_i32_45 = arith.constant 63 : i32
      %134 = vector.broadcast %c63_i32_45 : i32 to vector<8x1xi32>
      %135 = arith.andi %127, %134 : vector<8x1xi32>
      %c63_i32_46 = arith.constant 63 : i32
      %136 = vector.broadcast %c63_i32_46 : i32 to vector<8x1xi32>
      %137 = arith.subi %136, %135 : vector<8x1xi32>
      %c4_i32 = arith.constant 4 : i32
      %138 = vector.broadcast %c4_i32 : i32 to vector<8x16xi32>
      %139 = arith.cmpi eq, %35, %138 : vector<8x16xi32>
      %140 = vector.shape_cast %137 : vector<8x1xi32> to vector<8x1xi32>
      %141 = vector.broadcast %140 : vector<8x1xi32> to vector<8x16xi32>
      %142 = arith.select %139, %141, %120 : vector<8x16xi1>, vector<8x16xi32>
      %143 = vector.shape_cast %133 : vector<8x1xf32> to vector<8x1xf32>
      %144 = vector.broadcast %143 : vector<8x1xf32> to vector<8x16xf32>
      %145 = arith.select %139, %144, %123 : vector<8x16xi1>, vector<8x16xf32>
      %c-2147483648_i32_47 = arith.constant -2147483648 : i32
      %146 = vector.broadcast %c-2147483648_i32_47 : i32 to vector<8x64xi32>
      %147 = arith.select %129, %146, %125 : vector<8x64xi1>, vector<8x64xi32>
      %cst_48 = arith.constant dense<-2147483648> : vector<8xi32>
      %148 = vector.multi_reduction <maxsi>, %147, %cst_48 [1] : vector<8x64xi32> to vector<8xi32>
      %149 = vector.shape_cast %148 : vector<8xi32> to vector<8x1xi32>
      %150 = vector.broadcast %149 : vector<8x1xi32> to vector<8x64xi32>
      %151 = arith.cmpi eq, %147, %150 : vector<8x64xi32>
      %cst_49 = arith.constant -1.000000e+00 : f32
      %152 = vector.broadcast %cst_49 : f32 to vector<8x64xf32>
      %153 = arith.select %151, %27, %152 : vector<8x64xi1>, vector<8x64xf32>
      %cst_50 = arith.constant dense<0xFF800000> : vector<8xf32>
      %154 = vector.multi_reduction <maximumf>, %153, %cst_50 [1] : vector<8x64xf32> to vector<8xf32>
      %155 = vector.shape_cast %154 : vector<8xf32> to vector<8x1xf32>
      %c63_i32_51 = arith.constant 63 : i32
      %156 = vector.broadcast %c63_i32_51 : i32 to vector<8x1xi32>
      %157 = arith.andi %149, %156 : vector<8x1xi32>
      %c63_i32_52 = arith.constant 63 : i32
      %158 = vector.broadcast %c63_i32_52 : i32 to vector<8x1xi32>
      %159 = arith.subi %158, %157 : vector<8x1xi32>
      %c5_i32 = arith.constant 5 : i32
      %160 = vector.broadcast %c5_i32 : i32 to vector<8x16xi32>
      %161 = arith.cmpi eq, %35, %160 : vector<8x16xi32>
      %162 = vector.shape_cast %159 : vector<8x1xi32> to vector<8x1xi32>
      %163 = vector.broadcast %162 : vector<8x1xi32> to vector<8x16xi32>
      %164 = arith.select %161, %163, %142 : vector<8x16xi1>, vector<8x16xi32>
      %165 = vector.shape_cast %155 : vector<8x1xf32> to vector<8x1xf32>
      %166 = vector.broadcast %165 : vector<8x1xf32> to vector<8x16xf32>
      %167 = arith.select %161, %166, %145 : vector<8x16xi1>, vector<8x16xf32>
      %c-2147483648_i32_53 = arith.constant -2147483648 : i32
      %168 = vector.broadcast %c-2147483648_i32_53 : i32 to vector<8x64xi32>
      %169 = arith.select %151, %168, %147 : vector<8x64xi1>, vector<8x64xi32>
      %cst_54 = arith.constant dense<-2147483648> : vector<8xi32>
      %170 = vector.multi_reduction <maxsi>, %169, %cst_54 [1] : vector<8x64xi32> to vector<8xi32>
      %171 = vector.shape_cast %170 : vector<8xi32> to vector<8x1xi32>
      %172 = vector.broadcast %171 : vector<8x1xi32> to vector<8x64xi32>
      %173 = arith.cmpi eq, %169, %172 : vector<8x64xi32>
      %cst_55 = arith.constant -1.000000e+00 : f32
      %174 = vector.broadcast %cst_55 : f32 to vector<8x64xf32>
      %175 = arith.select %173, %27, %174 : vector<8x64xi1>, vector<8x64xf32>
      %cst_56 = arith.constant dense<0xFF800000> : vector<8xf32>
      %176 = vector.multi_reduction <maximumf>, %175, %cst_56 [1] : vector<8x64xf32> to vector<8xf32>
      %177 = vector.shape_cast %176 : vector<8xf32> to vector<8x1xf32>
      %c63_i32_57 = arith.constant 63 : i32
      %178 = vector.broadcast %c63_i32_57 : i32 to vector<8x1xi32>
      %179 = arith.andi %171, %178 : vector<8x1xi32>
      %c63_i32_58 = arith.constant 63 : i32
      %180 = vector.broadcast %c63_i32_58 : i32 to vector<8x1xi32>
      %181 = arith.subi %180, %179 : vector<8x1xi32>
      %c6_i32 = arith.constant 6 : i32
      %182 = vector.broadcast %c6_i32 : i32 to vector<8x16xi32>
      %183 = arith.cmpi eq, %35, %182 : vector<8x16xi32>
      %184 = vector.shape_cast %181 : vector<8x1xi32> to vector<8x1xi32>
      %185 = vector.broadcast %184 : vector<8x1xi32> to vector<8x16xi32>
      %186 = arith.select %183, %185, %164 : vector<8x16xi1>, vector<8x16xi32>
      %187 = vector.shape_cast %177 : vector<8x1xf32> to vector<8x1xf32>
      %188 = vector.broadcast %187 : vector<8x1xf32> to vector<8x16xf32>
      %189 = arith.select %183, %188, %167 : vector<8x16xi1>, vector<8x16xf32>
      %c-2147483648_i32_59 = arith.constant -2147483648 : i32
      %190 = vector.broadcast %c-2147483648_i32_59 : i32 to vector<8x64xi32>
      %191 = arith.select %173, %190, %169 : vector<8x64xi1>, vector<8x64xi32>
      %cst_60 = arith.constant dense<-2147483648> : vector<8xi32>
      %192 = vector.multi_reduction <maxsi>, %191, %cst_60 [1] : vector<8x64xi32> to vector<8xi32>
      %193 = vector.shape_cast %192 : vector<8xi32> to vector<8x1xi32>
      %194 = vector.broadcast %193 : vector<8x1xi32> to vector<8x64xi32>
      %195 = arith.cmpi eq, %191, %194 : vector<8x64xi32>
      %cst_61 = arith.constant -1.000000e+00 : f32
      %196 = vector.broadcast %cst_61 : f32 to vector<8x64xf32>
      %197 = arith.select %195, %27, %196 : vector<8x64xi1>, vector<8x64xf32>
      %cst_62 = arith.constant dense<0xFF800000> : vector<8xf32>
      %198 = vector.multi_reduction <maximumf>, %197, %cst_62 [1] : vector<8x64xf32> to vector<8xf32>
      %199 = vector.shape_cast %198 : vector<8xf32> to vector<8x1xf32>
      %c63_i32_63 = arith.constant 63 : i32
      %200 = vector.broadcast %c63_i32_63 : i32 to vector<8x1xi32>
      %201 = arith.andi %193, %200 : vector<8x1xi32>
      %c63_i32_64 = arith.constant 63 : i32
      %202 = vector.broadcast %c63_i32_64 : i32 to vector<8x1xi32>
      %203 = arith.subi %202, %201 : vector<8x1xi32>
      %c7_i32 = arith.constant 7 : i32
      %204 = vector.broadcast %c7_i32 : i32 to vector<8x16xi32>
      %205 = arith.cmpi eq, %35, %204 : vector<8x16xi32>
      %206 = vector.shape_cast %203 : vector<8x1xi32> to vector<8x1xi32>
      %207 = vector.broadcast %206 : vector<8x1xi32> to vector<8x16xi32>
      %208 = arith.select %205, %207, %186 : vector<8x16xi1>, vector<8x16xi32>
      %209 = vector.shape_cast %199 : vector<8x1xf32> to vector<8x1xf32>
      %210 = vector.broadcast %209 : vector<8x1xf32> to vector<8x16xf32>
      %211 = arith.select %205, %210, %189 : vector<8x16xi1>, vector<8x16xf32>
      %c-2147483648_i32_65 = arith.constant -2147483648 : i32
      %212 = vector.broadcast %c-2147483648_i32_65 : i32 to vector<8x64xi32>
      %213 = arith.select %195, %212, %191 : vector<8x64xi1>, vector<8x64xi32>
      %cst_66 = arith.constant dense<-2147483648> : vector<8xi32>
      %214 = vector.multi_reduction <maxsi>, %213, %cst_66 [1] : vector<8x64xi32> to vector<8xi32>
      %215 = vector.shape_cast %214 : vector<8xi32> to vector<8x1xi32>
      %216 = vector.broadcast %215 : vector<8x1xi32> to vector<8x64xi32>
      %217 = arith.cmpi eq, %213, %216 : vector<8x64xi32>
      %cst_67 = arith.constant -1.000000e+00 : f32
      %218 = vector.broadcast %cst_67 : f32 to vector<8x64xf32>
      %219 = arith.select %217, %27, %218 : vector<8x64xi1>, vector<8x64xf32>
      %cst_68 = arith.constant dense<0xFF800000> : vector<8xf32>
      %220 = vector.multi_reduction <maximumf>, %219, %cst_68 [1] : vector<8x64xf32> to vector<8xf32>
      %221 = vector.shape_cast %220 : vector<8xf32> to vector<8x1xf32>
      %c63_i32_69 = arith.constant 63 : i32
      %222 = vector.broadcast %c63_i32_69 : i32 to vector<8x1xi32>
      %223 = arith.andi %215, %222 : vector<8x1xi32>
      %c63_i32_70 = arith.constant 63 : i32
      %224 = vector.broadcast %c63_i32_70 : i32 to vector<8x1xi32>
      %225 = arith.subi %224, %223 : vector<8x1xi32>
      %c8_i32 = arith.constant 8 : i32
      %226 = vector.broadcast %c8_i32 : i32 to vector<8x16xi32>
      %227 = arith.cmpi eq, %35, %226 : vector<8x16xi32>
      %228 = vector.shape_cast %225 : vector<8x1xi32> to vector<8x1xi32>
      %229 = vector.broadcast %228 : vector<8x1xi32> to vector<8x16xi32>
      %230 = arith.select %227, %229, %208 : vector<8x16xi1>, vector<8x16xi32>
      %231 = vector.shape_cast %221 : vector<8x1xf32> to vector<8x1xf32>
      %232 = vector.broadcast %231 : vector<8x1xf32> to vector<8x16xf32>
      %233 = arith.select %227, %232, %211 : vector<8x16xi1>, vector<8x16xf32>
      %c-2147483648_i32_71 = arith.constant -2147483648 : i32
      %234 = vector.broadcast %c-2147483648_i32_71 : i32 to vector<8x64xi32>
      %235 = arith.select %217, %234, %213 : vector<8x64xi1>, vector<8x64xi32>
      %cst_72 = arith.constant dense<-2147483648> : vector<8xi32>
      %236 = vector.multi_reduction <maxsi>, %235, %cst_72 [1] : vector<8x64xi32> to vector<8xi32>
      %237 = vector.shape_cast %236 : vector<8xi32> to vector<8x1xi32>
      %238 = vector.broadcast %237 : vector<8x1xi32> to vector<8x64xi32>
      %239 = arith.cmpi eq, %235, %238 : vector<8x64xi32>
      %cst_73 = arith.constant -1.000000e+00 : f32
      %240 = vector.broadcast %cst_73 : f32 to vector<8x64xf32>
      %241 = arith.select %239, %27, %240 : vector<8x64xi1>, vector<8x64xf32>
      %cst_74 = arith.constant dense<0xFF800000> : vector<8xf32>
      %242 = vector.multi_reduction <maximumf>, %241, %cst_74 [1] : vector<8x64xf32> to vector<8xf32>
      %243 = vector.shape_cast %242 : vector<8xf32> to vector<8x1xf32>
      %c63_i32_75 = arith.constant 63 : i32
      %244 = vector.broadcast %c63_i32_75 : i32 to vector<8x1xi32>
      %245 = arith.andi %237, %244 : vector<8x1xi32>
      %c63_i32_76 = arith.constant 63 : i32
      %246 = vector.broadcast %c63_i32_76 : i32 to vector<8x1xi32>
      %247 = arith.subi %246, %245 : vector<8x1xi32>
      %c9_i32 = arith.constant 9 : i32
      %248 = vector.broadcast %c9_i32 : i32 to vector<8x16xi32>
      %249 = arith.cmpi eq, %35, %248 : vector<8x16xi32>
      %250 = vector.shape_cast %247 : vector<8x1xi32> to vector<8x1xi32>
      %251 = vector.broadcast %250 : vector<8x1xi32> to vector<8x16xi32>
      %252 = arith.select %249, %251, %230 : vector<8x16xi1>, vector<8x16xi32>
      %253 = vector.shape_cast %243 : vector<8x1xf32> to vector<8x1xf32>
      %254 = vector.broadcast %253 : vector<8x1xf32> to vector<8x16xf32>
      %255 = arith.select %249, %254, %233 : vector<8x16xi1>, vector<8x16xf32>
      %c-2147483648_i32_77 = arith.constant -2147483648 : i32
      %256 = vector.broadcast %c-2147483648_i32_77 : i32 to vector<8x64xi32>
      %257 = arith.select %239, %256, %235 : vector<8x64xi1>, vector<8x64xi32>
      %cst_78 = arith.constant dense<-2147483648> : vector<8xi32>
      %258 = vector.multi_reduction <maxsi>, %257, %cst_78 [1] : vector<8x64xi32> to vector<8xi32>
      %259 = vector.shape_cast %258 : vector<8xi32> to vector<8x1xi32>
      %260 = vector.broadcast %259 : vector<8x1xi32> to vector<8x64xi32>
      %261 = arith.cmpi eq, %257, %260 : vector<8x64xi32>
      %cst_79 = arith.constant -1.000000e+00 : f32
      %262 = vector.broadcast %cst_79 : f32 to vector<8x64xf32>
      %263 = arith.select %261, %27, %262 : vector<8x64xi1>, vector<8x64xf32>
      %cst_80 = arith.constant dense<0xFF800000> : vector<8xf32>
      %264 = vector.multi_reduction <maximumf>, %263, %cst_80 [1] : vector<8x64xf32> to vector<8xf32>
      %265 = vector.shape_cast %264 : vector<8xf32> to vector<8x1xf32>
      %c63_i32_81 = arith.constant 63 : i32
      %266 = vector.broadcast %c63_i32_81 : i32 to vector<8x1xi32>
      %267 = arith.andi %259, %266 : vector<8x1xi32>
      %c63_i32_82 = arith.constant 63 : i32
      %268 = vector.broadcast %c63_i32_82 : i32 to vector<8x1xi32>
      %269 = arith.subi %268, %267 : vector<8x1xi32>
      %c10_i32 = arith.constant 10 : i32
      %270 = vector.broadcast %c10_i32 : i32 to vector<8x16xi32>
      %271 = arith.cmpi eq, %35, %270 : vector<8x16xi32>
      %272 = vector.shape_cast %269 : vector<8x1xi32> to vector<8x1xi32>
      %273 = vector.broadcast %272 : vector<8x1xi32> to vector<8x16xi32>
      %274 = arith.select %271, %273, %252 : vector<8x16xi1>, vector<8x16xi32>
      %275 = vector.shape_cast %265 : vector<8x1xf32> to vector<8x1xf32>
      %276 = vector.broadcast %275 : vector<8x1xf32> to vector<8x16xf32>
      %277 = arith.select %271, %276, %255 : vector<8x16xi1>, vector<8x16xf32>
      %c-2147483648_i32_83 = arith.constant -2147483648 : i32
      %278 = vector.broadcast %c-2147483648_i32_83 : i32 to vector<8x64xi32>
      %279 = arith.select %261, %278, %257 : vector<8x64xi1>, vector<8x64xi32>
      %cst_84 = arith.constant dense<-2147483648> : vector<8xi32>
      %280 = vector.multi_reduction <maxsi>, %279, %cst_84 [1] : vector<8x64xi32> to vector<8xi32>
      %281 = vector.shape_cast %280 : vector<8xi32> to vector<8x1xi32>
      %282 = vector.broadcast %281 : vector<8x1xi32> to vector<8x64xi32>
      %283 = arith.cmpi eq, %279, %282 : vector<8x64xi32>
      %cst_85 = arith.constant -1.000000e+00 : f32
      %284 = vector.broadcast %cst_85 : f32 to vector<8x64xf32>
      %285 = arith.select %283, %27, %284 : vector<8x64xi1>, vector<8x64xf32>
      %cst_86 = arith.constant dense<0xFF800000> : vector<8xf32>
      %286 = vector.multi_reduction <maximumf>, %285, %cst_86 [1] : vector<8x64xf32> to vector<8xf32>
      %287 = vector.shape_cast %286 : vector<8xf32> to vector<8x1xf32>
      %c63_i32_87 = arith.constant 63 : i32
      %288 = vector.broadcast %c63_i32_87 : i32 to vector<8x1xi32>
      %289 = arith.andi %281, %288 : vector<8x1xi32>
      %c63_i32_88 = arith.constant 63 : i32
      %290 = vector.broadcast %c63_i32_88 : i32 to vector<8x1xi32>
      %291 = arith.subi %290, %289 : vector<8x1xi32>
      %c11_i32 = arith.constant 11 : i32
      %292 = vector.broadcast %c11_i32 : i32 to vector<8x16xi32>
      %293 = arith.cmpi eq, %35, %292 : vector<8x16xi32>
      %294 = vector.shape_cast %291 : vector<8x1xi32> to vector<8x1xi32>
      %295 = vector.broadcast %294 : vector<8x1xi32> to vector<8x16xi32>
      %296 = arith.select %293, %295, %274 : vector<8x16xi1>, vector<8x16xi32>
      %297 = vector.shape_cast %287 : vector<8x1xf32> to vector<8x1xf32>
      %298 = vector.broadcast %297 : vector<8x1xf32> to vector<8x16xf32>
      %299 = arith.select %293, %298, %277 : vector<8x16xi1>, vector<8x16xf32>
      %c-2147483648_i32_89 = arith.constant -2147483648 : i32
      %300 = vector.broadcast %c-2147483648_i32_89 : i32 to vector<8x64xi32>
      %301 = arith.select %283, %300, %279 : vector<8x64xi1>, vector<8x64xi32>
      %cst_90 = arith.constant dense<-2147483648> : vector<8xi32>
      %302 = vector.multi_reduction <maxsi>, %301, %cst_90 [1] : vector<8x64xi32> to vector<8xi32>
      %303 = vector.shape_cast %302 : vector<8xi32> to vector<8x1xi32>
      %304 = vector.broadcast %303 : vector<8x1xi32> to vector<8x64xi32>
      %305 = arith.cmpi eq, %301, %304 : vector<8x64xi32>
      %cst_91 = arith.constant -1.000000e+00 : f32
      %306 = vector.broadcast %cst_91 : f32 to vector<8x64xf32>
      %307 = arith.select %305, %27, %306 : vector<8x64xi1>, vector<8x64xf32>
      %cst_92 = arith.constant dense<0xFF800000> : vector<8xf32>
      %308 = vector.multi_reduction <maximumf>, %307, %cst_92 [1] : vector<8x64xf32> to vector<8xf32>
      %309 = vector.shape_cast %308 : vector<8xf32> to vector<8x1xf32>
      %c63_i32_93 = arith.constant 63 : i32
      %310 = vector.broadcast %c63_i32_93 : i32 to vector<8x1xi32>
      %311 = arith.andi %303, %310 : vector<8x1xi32>
      %c63_i32_94 = arith.constant 63 : i32
      %312 = vector.broadcast %c63_i32_94 : i32 to vector<8x1xi32>
      %313 = arith.subi %312, %311 : vector<8x1xi32>
      %c12_i32 = arith.constant 12 : i32
      %314 = vector.broadcast %c12_i32 : i32 to vector<8x16xi32>
      %315 = arith.cmpi eq, %35, %314 : vector<8x16xi32>
      %316 = vector.shape_cast %313 : vector<8x1xi32> to vector<8x1xi32>
      %317 = vector.broadcast %316 : vector<8x1xi32> to vector<8x16xi32>
      %318 = arith.select %315, %317, %296 : vector<8x16xi1>, vector<8x16xi32>
      %319 = vector.shape_cast %309 : vector<8x1xf32> to vector<8x1xf32>
      %320 = vector.broadcast %319 : vector<8x1xf32> to vector<8x16xf32>
      %321 = arith.select %315, %320, %299 : vector<8x16xi1>, vector<8x16xf32>
      %c-2147483648_i32_95 = arith.constant -2147483648 : i32
      %322 = vector.broadcast %c-2147483648_i32_95 : i32 to vector<8x64xi32>
      %323 = arith.select %305, %322, %301 : vector<8x64xi1>, vector<8x64xi32>
      %cst_96 = arith.constant dense<-2147483648> : vector<8xi32>
      %324 = vector.multi_reduction <maxsi>, %323, %cst_96 [1] : vector<8x64xi32> to vector<8xi32>
      %325 = vector.shape_cast %324 : vector<8xi32> to vector<8x1xi32>
      %326 = vector.broadcast %325 : vector<8x1xi32> to vector<8x64xi32>
      %327 = arith.cmpi eq, %323, %326 : vector<8x64xi32>
      %cst_97 = arith.constant -1.000000e+00 : f32
      %328 = vector.broadcast %cst_97 : f32 to vector<8x64xf32>
      %329 = arith.select %327, %27, %328 : vector<8x64xi1>, vector<8x64xf32>
      %cst_98 = arith.constant dense<0xFF800000> : vector<8xf32>
      %330 = vector.multi_reduction <maximumf>, %329, %cst_98 [1] : vector<8x64xf32> to vector<8xf32>
      %331 = vector.shape_cast %330 : vector<8xf32> to vector<8x1xf32>
      %c63_i32_99 = arith.constant 63 : i32
      %332 = vector.broadcast %c63_i32_99 : i32 to vector<8x1xi32>
      %333 = arith.andi %325, %332 : vector<8x1xi32>
      %c63_i32_100 = arith.constant 63 : i32
      %334 = vector.broadcast %c63_i32_100 : i32 to vector<8x1xi32>
      %335 = arith.subi %334, %333 : vector<8x1xi32>
      %c13_i32 = arith.constant 13 : i32
      %336 = vector.broadcast %c13_i32 : i32 to vector<8x16xi32>
      %337 = arith.cmpi eq, %35, %336 : vector<8x16xi32>
      %338 = vector.shape_cast %335 : vector<8x1xi32> to vector<8x1xi32>
      %339 = vector.broadcast %338 : vector<8x1xi32> to vector<8x16xi32>
      %340 = arith.select %337, %339, %318 : vector<8x16xi1>, vector<8x16xi32>
      %341 = vector.shape_cast %331 : vector<8x1xf32> to vector<8x1xf32>
      %342 = vector.broadcast %341 : vector<8x1xf32> to vector<8x16xf32>
      %343 = arith.select %337, %342, %321 : vector<8x16xi1>, vector<8x16xf32>
      %c-2147483648_i32_101 = arith.constant -2147483648 : i32
      %344 = vector.broadcast %c-2147483648_i32_101 : i32 to vector<8x64xi32>
      %345 = arith.select %327, %344, %323 : vector<8x64xi1>, vector<8x64xi32>
      %cst_102 = arith.constant dense<-2147483648> : vector<8xi32>
      %346 = vector.multi_reduction <maxsi>, %345, %cst_102 [1] : vector<8x64xi32> to vector<8xi32>
      %347 = vector.shape_cast %346 : vector<8xi32> to vector<8x1xi32>
      %348 = vector.broadcast %347 : vector<8x1xi32> to vector<8x64xi32>
      %349 = arith.cmpi eq, %345, %348 : vector<8x64xi32>
      %cst_103 = arith.constant -1.000000e+00 : f32
      %350 = vector.broadcast %cst_103 : f32 to vector<8x64xf32>
      %351 = arith.select %349, %27, %350 : vector<8x64xi1>, vector<8x64xf32>
      %cst_104 = arith.constant dense<0xFF800000> : vector<8xf32>
      %352 = vector.multi_reduction <maximumf>, %351, %cst_104 [1] : vector<8x64xf32> to vector<8xf32>
      %353 = vector.shape_cast %352 : vector<8xf32> to vector<8x1xf32>
      %c63_i32_105 = arith.constant 63 : i32
      %354 = vector.broadcast %c63_i32_105 : i32 to vector<8x1xi32>
      %355 = arith.andi %347, %354 : vector<8x1xi32>
      %c63_i32_106 = arith.constant 63 : i32
      %356 = vector.broadcast %c63_i32_106 : i32 to vector<8x1xi32>
      %357 = arith.subi %356, %355 : vector<8x1xi32>
      %c14_i32 = arith.constant 14 : i32
      %358 = vector.broadcast %c14_i32 : i32 to vector<8x16xi32>
      %359 = arith.cmpi eq, %35, %358 : vector<8x16xi32>
      %360 = vector.shape_cast %357 : vector<8x1xi32> to vector<8x1xi32>
      %361 = vector.broadcast %360 : vector<8x1xi32> to vector<8x16xi32>
      %362 = arith.select %359, %361, %340 : vector<8x16xi1>, vector<8x16xi32>
      %363 = vector.shape_cast %353 : vector<8x1xf32> to vector<8x1xf32>
      %364 = vector.broadcast %363 : vector<8x1xf32> to vector<8x16xf32>
      %365 = arith.select %359, %364, %343 : vector<8x16xi1>, vector<8x16xf32>
      %c-2147483648_i32_107 = arith.constant -2147483648 : i32
      %366 = vector.broadcast %c-2147483648_i32_107 : i32 to vector<8x64xi32>
      %367 = arith.select %349, %366, %345 : vector<8x64xi1>, vector<8x64xi32>
      %cst_108 = arith.constant dense<-2147483648> : vector<8xi32>
      %368 = vector.multi_reduction <maxsi>, %367, %cst_108 [1] : vector<8x64xi32> to vector<8xi32>
      %369 = vector.shape_cast %368 : vector<8xi32> to vector<8x1xi32>
      %370 = vector.broadcast %369 : vector<8x1xi32> to vector<8x64xi32>
      %371 = arith.cmpi eq, %367, %370 : vector<8x64xi32>
      %cst_109 = arith.constant -1.000000e+00 : f32
      %372 = vector.broadcast %cst_109 : f32 to vector<8x64xf32>
      %373 = arith.select %371, %27, %372 : vector<8x64xi1>, vector<8x64xf32>
      %cst_110 = arith.constant dense<0xFF800000> : vector<8xf32>
      %374 = vector.multi_reduction <maximumf>, %373, %cst_110 [1] : vector<8x64xf32> to vector<8xf32>
      %375 = vector.shape_cast %374 : vector<8xf32> to vector<8x1xf32>
      %c63_i32_111 = arith.constant 63 : i32
      %376 = vector.broadcast %c63_i32_111 : i32 to vector<8x1xi32>
      %377 = arith.andi %369, %376 : vector<8x1xi32>
      %c63_i32_112 = arith.constant 63 : i32
      %378 = vector.broadcast %c63_i32_112 : i32 to vector<8x1xi32>
      %379 = arith.subi %378, %377 : vector<8x1xi32>
      %c15_i32 = arith.constant 15 : i32
      %380 = vector.broadcast %c15_i32 : i32 to vector<8x16xi32>
      %381 = arith.cmpi eq, %35, %380 : vector<8x16xi32>
      %382 = vector.shape_cast %379 : vector<8x1xi32> to vector<8x1xi32>
      %383 = vector.broadcast %382 : vector<8x1xi32> to vector<8x16xi32>
      %384 = arith.select %381, %383, %362 : vector<8x16xi1>, vector<8x16xi32>
      %385 = vector.shape_cast %375 : vector<8x1xf32> to vector<8x1xf32>
      %386 = vector.broadcast %385 : vector<8x1xf32> to vector<8x16xf32>
      %387 = arith.select %381, %386, %365 : vector<8x16xi1>, vector<8x16xf32>
      %c0_113 = arith.constant 0 : index
      %c0_114 = arith.constant 0 : index
      %c0_115 = arith.constant 0 : index
      %388 = vector.load %arg4[%c0_113, %c0_114, %c0_115] : memref<1x8x16xi32, #tpu.memory_space<vmem>>, vector<1x8x16xi32>
      %389 = vector.shape_cast %388 : vector<1x8x16xi32> to vector<8x16xi32>
      %390 = vector.shape_cast %384 : vector<8x16xi32> to vector<1x8x16xi32>
      tpu.vector_store %arg4[%c0_113, %c0_114, %c0_115], %390 {strides = array<i32>} : memref<1x8x16xi32, #tpu.memory_space<vmem>>, vector<1x8x16xi32>,
      %c0_116 = arith.constant 0 : index
      %c0_117 = arith.constant 0 : index
      %c0_118 = arith.constant 0 : index
      %391 = vector.load %arg5[%c0_116, %c0_117, %c0_118] : memref<1x8x16xf32, #tpu.memory_space<vmem>>, vector<1x8x16xf32>
      %392 = vector.shape_cast %391 : vector<1x8x16xf32> to vector<8x16xf32>
      %393 = vector.shape_cast %387 : vector<8x16xf32> to vector<1x8x16xf32>
      tpu.vector_store %arg5[%c0_116, %c0_117, %c0_118], %393 {strides = array<i32>} : memref<1x8x16xf32, #tpu.memory_space<vmem>>, vector<1x8x16xf32>,
    } else {
    }
    return
  }
  func.func @transform_0(%arg0: i32, %arg1: i32) -> (i32, i32, i32) {
    %c0_i32 = arith.constant 0 : i32
    %c0_i32_0 = arith.constant 0 : i32
    return %arg0, %c0_i32, %arg1 : i32, i32, i32
  }
  func.func @transform_1(%arg0: i32, %arg1: i32) -> (i32, i32) {
    %c0_i32 = arith.constant 0 : i32
    %c0_i32_0 = arith.constant 0 : i32
    return %c0_i32, %arg1 : i32, i32
  }
  func.func @transform_2(%arg0: i32, %arg1: i32) -> (i32, i32, i32) {
    %c0_i32 = arith.constant 0 : i32
    %c0_i32_0 = arith.constant 0 : i32
    %c0_i32_1 = arith.constant 0 : i32
    return %arg0, %c0_i32, %c0_i32_0 : i32, i32, i32
  }
  func.func @transform_3(%arg0: i32, %arg1: i32) -> (i32, i32, i32) {
    %c0_i32 = arith.constant 0 : i32
    %c0_i32_0 = arith.constant 0 : i32
    %c0_i32_1 = arith.constant 0 : i32
    return %arg0, %c0_i32, %c0_i32_0 : i32, i32, i32
  }
}

</mosaic_0001>

<bundles_post_ra>
// kernel: tpu_custom_call.1
= control target key start
LH: loop header
LB: loop body
LE: loop exit
PB: predicated region body
PF: predicated region fallthrough
CT: control target
= control target key end

     0   :  { %9 = vsyncpa [#allocation4], 0  ;;  %s1737_s0 = inlined_call_operand.vmem [shape: f32[2,64,32], index: 0, kind: input, shape index: {}]   ;;  %s1738_s1 = inlined_call_operand.vmem [shape: f32[8,32], index: 1, kind: input, shape index: {}]   ;;  %s1739_s2 = inlined_call_operand.hbm [shape: s32[2,8,16], index: 2, kind: output, shape index: {0}]   ;;  %s1740_s3 = inlined_call_operand.hbm [shape: f32[2,8,16], index: 3, kind: output, shape index: {1}]  }
   0x1   :  { %11 = vsyncpa [#allocation4 + $0x1], 0 }
   0x2   :  { %12 = vsyncpa [#allocation6], 0 }
   0x3   :  { %14 = vsyncpa [#allocation6 + $0x1], 0  ;;  %s1213_s12 = smov 0   ;;  %s1215_s13 = smov 0  }
   0x4   :  { %s1217_s14 = smov 0   ;;  %s1219_s15 = smov 0  }
   0x5   :  { %s1221_s16 = smov 0   ;;  %s1223_s17 = smov 0  }
   0x6 LB: > { %s939_s18 = sadd.s32 4294967295, %s1186_s17   ;;  %s940_s19 = sadd.s32 4294967294, %s1186_s17   ;;  %s1186_s17 = sphi %s1223_s17, %s20_s17   ;;  %s1182_s16 = sphi %s1221_s16, %s1781_s16   ;;  %s1178_s15 = sphi %s1219_s15, %s1780_s15   ;;  %s1174_s14 = sphi %s1217_s14, %s1779_s14   ;;  %s1170_s13 = sphi %s1215_s13, %s1778_s13   ;;  %s1166_s12 = sphi %s1213_s12, %s1777_s12  }
   0x7   : > { %s32_s20 = sadd.s32 1, %s1182_s16  ;;  %s93_s21 = sadd.s32 1, %s1174_s14 }
   0x8   : > { %p34_p0 = scmp.ge.s32.totalorder %s32_s20, 2  ;;  %p103_p1 = scmp.ne.s32.totalorder %s1174_s14, %s1170_s13 }
   0x9   : > { %p104_p2 = scmp.eq.s32.totalorder %s939_s18, 1  ;;  %p109_p3 = scmp.ne.s32.totalorder %s1170_s13, %s1166_s12 }
   0xa   : > { %s1783_s20 = smov (%p34_p0, %s32_s20), 0  ;;  %p110_p5 = scmp.eq.s32.totalorder %s940_s19, 1 }
   0xb   : > { %p1253_p4 = por %p104_p2, %p103_p1  ;;  %s90_s23 = ssub.s32 %s1182_s16, %s1783_s20 }
   0xc   : > { %p944_p6 = scmp.ge.s32.totalorder %s1186_s17, 1  ;;  %p91_p7 = scmp.eq.s32.totalorder %s90_s23, 0 }
   0xd   : > { %p1260_p8 = por %p110_p5, %p109_p3  ;;  %p172_p9 = scmp.lt.s32.totalorder %s1186_s17, 3 }
   0xe   : > { %s1266_s25 = scalar_select %p91_p7, %s1174_s14, %s93_s21  }
   0xf   : > { %p173_p10 = pnand %p944_p6, %p172_p9 }
  0x10   : > { %p208_p11 = scmp.lt.s32.totalorder (!%p173_p10), %s1178_s15, 1  ;;  %vm224_vm0 = vcmask (!%p173_p10), 523264   ;;  %v1188_v0 = vmov (!%p173_p10), 0.0|0.0   ;;  %v1189_v1 = vmov (!%p173_p10), 0.0   ;;  %vm1190_vm1 = vmmov (!%p173_p10), 0   ;;  %v227_v15 = vld [vmem:[%s1738_s1] sm:$0xff] (!%p173_p10) }
  0x11   : > { %176 = sbr.rel (%p173_p10) target bundleno = 5258 (0x148a), region = 28  ;;  %993 = vmatprep.subr.bf16.mxu0 (!%p173_p10), %v1188_v0  ;;  %225 = vst.msk [vmem:[#allocation2] sm:$0xff] (!%p173_p10), %vm224_vm0, %v1189_v1  ;;  %990 = vmatprep.mubr.msk.f32.mxu0 (!%p173_p10), %vm1190_vm1, %v1189_v1  ;;  %vm236_vm2 = vcmask (!%p173_p10), 261120   ;;  %v363_v38 = vlaneseq (!%p173_p10)  ;;  %s1610_s6 = sand.u32 (!%p173_p10), 1, %s1170_s13  }
  0x12   : > { %vm1276_vm3 = vmpackc.low (!%p173_p10), %vm236_vm2, %vm236_vm2  ;;  %s945_s7 = sshll.u32 (!%p173_p10), %s1610_s6, 3  ;;  %s960_s9 = sshll.u32 (!%p173_p10), %s1178_s15, 7 }
  0x13   : > { %v1295_v42 = vand.u32 (!%p173_p10), 127, %v363_v38  ;;  %s200_s8 = scalar_lea.vmem (!%p173_p10), [#allocation3], %s945_s7  ;;  %s1629_s18 = scalar_lea.hbm (!%p173_p10), %s1739_s2, %s960_s9 }
  0x14   : > { %s806_s19 = sshll.u32 (!%p173_p10), %s200_s8, 4  ;;  %s788_s21 = scalar_lea.sflag (!%p173_p10), [#allocation4], %s1610_s6  ;;  %s807_s19 = int_to_ptr.vmem [resolvable:$true] %s806_s19 }
  0x15   : > { %v367_v45 = vsub.s32 (!%p173_p10), 63, %v1295_v42  ;;  %vm1751_vm8 = vcmp.eq.s32.totalorder (!%p173_p10), %v1295_v42, 0  ;;  %vm1749_vm9 = vcmp.eq.s32.totalorder (!%p173_p10), %v1295_v42, 1  ;;  %vm1747_vm12 = vcmp.eq.s32.totalorder (!%p173_p10), %v1295_v42, 2  ;;  %s1076_s23 = scalar_lea.vmem (!%p173_p10), %s807_s19, 128 }
  0x16   : > { %vm1745_vm15 = vcmp.eq.s32.totalorder (!%p173_p10), %v1295_v42, 3  ;;  %p1077_p12 = scmp.ne.s32.totalorder (!%p173_p10), %s807_s19, %s1076_s23 }
  0x18   : > { %s209_s26 = scalar_select %p208_p11, %s1178_s15, 1  ;;  %v226_v16 = vld [vmem:[#allocation2] sm:$0xff] }
  0x19   : > { %p1078_p13 = pnand %p1077_p12, %p1253_p4 }
  0x1a   : > { %s964_s27 = sshll.u32 %s209_s26, 6  ;;  %s1191_s26 = smov [#allocation3]  }
  0x1b   : > { %s215_s30 = scalar_lea.vmem %s1737_s0, %s964_s27  ;;  %p1079_p0 = pneg %p1078_p13 }
  0x1c   : > { %v228_v2 = vld [vmem:[%s215_s30] sm:$0xff]  ;;  %v229_v3 = vld [vmem:[%s215_s30 + $0x8] sm:$0xff]  ;;  %v230_v6 = vld [vmem:[%s215_s30 + $0x10] sm:$0xff]  ;;  %s1080_s27 = sshll.u32 %s1191_s26, 4  ;;  %s1081_s27 = int_to_ptr.vmem [resolvable:$false] %s1080_s27 }
  0x1d   : > { %v994_v5 = vpack.c.bf16 %v229_v3, %v228_v2  ;;  %v231_v7 = vld [vmem:[%s215_s30 + $0x18] sm:$0xff]  ;;  %v232_v9 = vld [vmem:[%s215_s30 + $0x20] sm:$0xff]  ;;  %v233_v10 = vld [vmem:[%s215_s30 + $0x28] sm:$0xff]  ;;  %s1082_s28 = scalar_lea.vmem %s1081_s27, 256  ;;  %p1083_p1 = scmp.lt.s32.totalorder %s807_s19, %s1081_s27 }
  0x1e   : > { %v998_v8 = vpack.c.bf16 %v231_v7, %v230_v6  ;;  %v1002_v11 = vpack.c.bf16 %v233_v10, %v232_v9  ;;  %v234_v12 = vld [vmem:[%s215_s30 + $0x30] sm:$0xff]  ;;  %v235_v13 = vld [vmem:[%s215_s30 + $0x38] sm:$0xff]  ;;  %p1084_p2 = scmp.lt.s32.totalorder %s1082_s28, %s1076_s23 }
  0x1f   : > { %996 = vmatpush3.bf16.xpose.msk.msra.mxu0 %vm1276_vm3, %v994_v5  ;;  %v1006_v14 = vpack.c.bf16 %v235_v13, %v234_v12 }
  0x20   : > { %997 = vmatprep.subr.bf16.mxu0 %v1188_v0  ;;  %p1085_p3 = por %p1084_p2, %p1083_p1 }
  0x22   : > { %p1086_p5 = pnand %p1085_p3, %p1079_p0 }
  0x27   : > { %1000 = vmatpush3.bf16.xpose.msk.msra.mxu0 %vm1276_vm3, %v998_v8 }
  0x28   : > { %1001 = vmatprep.subr.bf16.mxu0 %v1188_v0 }
  0x2f   : > { %1004 = vmatpush3.bf16.xpose.msk.msra.mxu0 %vm1276_vm3, %v1002_v11 }
  0x30   : > { %1005 = vmatprep.subr.bf16.mxu0 %v1188_v0 }
  0x37   : > { %1008 = vmatpush3.bf16.xpose.msk.msra.mxu0 %vm1276_vm3, %v1006_v14  ;;  %vm1743_vm3 = vcmp.eq.s32.totalorder %v1295_v42, 4 }
  0x3e   : > { %991 = vmatmul.mubr.msk.f32.vlgmr.msra.gmra.mrb[0].mxu0 %vm236_vm2, %v227_v15 }
 0x111   : > { %v330_v17 = vpop.f32.mrb[0].mxu0 }
 0x112   : > { %v334_v18 = vadd.f32 %v330_v17, %v226_v16  ;;  %v992_v19 = vpop.f32.mrb[1].mxu0 }
 0x114   : > { %336 = vst.msk [vmem:[#allocation2] sm:$0xff] %vm224_vm0, %v334_v18 }
 0x11b   : > { %v340_v20 = vld [vmem:[#allocation2] sm:$0xff] }
 0x11c   : > { %v341_v21 = vsel %vm224_vm0, %v340_v20, -inf }
 0x11d   : > { %v342_v22 = vrot.slane %v341_v21, 4 }
 0x11f   : > { %v343_v23 = vmax.f32 %v341_v21, %v342_v22 }
 0x121   : > { %v344_v24 = vrot.slane %v343_v23, 2 }
 0x123   : > { %v345_v25 = vmax.f32 %v343_v23, %v344_v24 }
 0x125   : > { %v346_v26 = vrot.slane %v345_v25, 1 }
 0x127   : > { %v347_v27 = vmax.f32 %v345_v25, %v346_v26 }
 0x129   : > { %v348_v28 = vsub.f32 %v340_v20, %v347_v27 }
 0x12b   : > { %v349_v29 = vmul.f32 1.442695, %v348_v28 }
 0x12d   : > { %1072 = vpow2.f32 %v349_v29 }
 0x137   : > { %v1073_v30 = vpop.eup %1072 }
 0x138   : > { %v351_v31 = vsel %vm224_vm0, %v1073_v30, 0.0 }
 0x139   : > { %v352_v32 = vrot.slane %v351_v31, 4 }
 0x13b   : > { %v353_v33 = vadd.f32 %v352_v32, %v351_v31 }
 0x13d   : > { %v354_v34 = vrot.slane %v353_v33, 2 }
 0x13f   : > { %v355_v35 = vadd.f32 %v354_v34, %v353_v33 }
 0x141   : > { %v356_v36 = vrot.slane %v355_v35, 1 }
 0x143   : > { %v357_v37 = vadd.f32 %v356_v36, %v355_v35 }
 0x145   : > { %1074 = vrcp.f32 %v357_v37 }
 0x14f   : > { %v1075_v39 = vpop.eup %1074 }
 0x150   : > { %v359_v40 = vmul.f32 %v1075_v39, %v357_v37 }
 0x152   : > { %v360_v41 = vsub.f32 2.0, %v359_v40 }
 0x154   : > { %v361_v43 = vmul.f32 %v1075_v39, %v360_v41 }
 0x156   : > { %v1297_v44 = vmul.f32 %v1073_v30, %v361_v43 }
 0x158   : > { %v366_v46 = vand.u32 4294967232, %v1297_v44 }
 0x15a   : > { %v1301_v47 = vor.u32 %v367_v45, %v366_v46 }
 0x15c   : > { %v369_v48 = vsel %vm224_vm0, %v1301_v47, 2147483648 }
 0x15d   : > { %v371_v49 = vshra.s32 %v369_v48, 16  ;;  %v370_v51 = vand.u32 65535, %v369_v48 }
 0x15f   : > { %v373_v50 = vcvt.s32.f32 %v371_v49  ;;  %v372_v53 = vcvt.s32.f32 %v370_v51 }
 0x161   : > { %374 = vmax.xlane.f32.xlu0 %v373_v50 }
 0x1ee   : > { %v375_v52 = vpop.xlane.xlu0 %374 }
 0x1ef   : > { %vm376_vm4 = vcmp.eq.f32.partialorder %v373_v50, %v375_v52  ;;  %v381_v55 = vcvt.f32.s32 %v375_v52 }
 0x1f0   : > { %v377_v54 = vsel %vm376_vm4, %v372_v53, -inf }
 0x1f1   : > { %378 = vmax.xlane.f32.xlu0 %v377_v54  ;;  %v382_v57 = vshll.u32 %v381_v55, 16 }
 0x27e   : > { %v379_v56 = vpop.xlane.xlu0 %378 }
 0x27f   : > { %v380_v58 = vcvt.f32.s32 %v379_v56 }
 0x281   : > { %v1305_v59 = vadd.s32 %v382_v57, %v380_v58 }
 0x283   : > { %vm384_vm5 = vcmp.eq.s32.totalorder %v1301_v47, %v1305_v59  ;;  %v389_v5 = vand.u32 63, %v1305_v59 }
 0x284   : > { %v1313_v60 = vsel %vm384_vm5, 2147483648, %v1301_v47 }
 0x285   : > { %v395_v61 = vsel %vm224_vm0, %v1313_v60, 2147483648  ;;  %v390_v10 = vsub.s32 63, %v389_v5 }
 0x286   : > { %v397_v62 = vshra.s32 %v395_v61, 16  ;;  %v396_v0 = vand.u32 65535, %v395_v61 }
 0x287   : > { %v392_v16 = vsel %vm1751_vm8, %v390_v10, 0 }
 0x288   : > { %v399_v63 = vcvt.s32.f32 %v397_v62  ;;  %v398_v2 = vcvt.s32.f32 %v396_v0 }
 0x28a   : > { %400 = vmax.xlane.f32.xlu1 %v399_v63 }
 0x317   : > { %v401_v1 = vpop.xlane.xlu1 %400 }
 0x318   : > { %vm402_vm6 = vcmp.eq.f32.partialorder %v399_v63, %v401_v1  ;;  %v407_v4 = vcvt.f32.s32 %v401_v1 }
 0x319   : > { %v403_v3 = vsel %vm402_vm6, %v398_v2, -inf }
 0x31a   : > { %404 = vmax.xlane.f32.xlu1 %v403_v3  ;;  %v408_v7 = vshll.u32 %v407_v4, 16 }
 0x3a7   : > { %v405_v6 = vpop.xlane.xlu1 %404 }
 0x3a8   : > { %v406_v8 = vcvt.f32.s32 %v405_v6 }
 0x3aa   : > { %v1318_v9 = vadd.s32 %v408_v7, %v406_v8 }
 0x3ac   : > { %vm410_vm7 = vcmp.eq.s32.totalorder %v1313_v60, %v1318_v9  ;;  %v415_v11 = vand.u32 63, %v1318_v9 }
 0x3ad   : > { %v1328_v12 = vsel %vm410_vm7, 2147483648, %v1313_v60 }
 0x3ae   : > { %v416_v13 = vsub.s32 63, %v415_v11  ;;  %v421_v14 = vsel %vm224_vm0, %v1328_v12, 2147483648 }
 0x3af   : > { %v423_v15 = vshra.s32 %v421_v14, 16  ;;  %v422_v19 = vand.u32 65535, %v421_v14 }
 0x3b0   : > { %v418_v17 = vsel %vm1749_vm9, %v416_v13, %v392_v16 }
 0x3b1   : > { %v425_v18 = vcvt.s32.f32 %v423_v15  ;;  %v424_v21 = vcvt.s32.f32 %v422_v19 }
 0x3b3   : > { %426 = vmax.xlane.f32.xlu0 %v425_v18 }
 0x440   : > { %v427_v20 = vpop.xlane.xlu0 %426 }
 0x441   : > { %vm428_vm10 = vcmp.eq.f32.partialorder %v425_v18, %v427_v20  ;;  %v433_v23 = vcvt.f32.s32 %v427_v20 }
 0x442   : > { %v429_v22 = vsel %vm428_vm10, %v424_v21, -inf  ;;  %vm1741_vm10 = vcmp.eq.s32.totalorder %v1295_v42, 5 }
 0x443   : > { %430 = vmax.xlane.f32.xlu1 %v429_v22  ;;  %v434_v25 = vshll.u32 %v433_v23, 16 }
 0x4d0   : > { %v431_v24 = vpop.xlane.xlu1 %430 }
 0x4d1   : > { %v432_v26 = vcvt.f32.s32 %v431_v24 }
 0x4d3   : > { %v1337_v27 = vadd.s32 %v434_v25, %v432_v26 }
 0x4d5   : > { %vm436_vm11 = vcmp.eq.s32.totalorder %v1328_v12, %v1337_v27  ;;  %v441_v28 = vand.u32 63, %v1337_v27 }
 0x4d6   : > { %v1346_v29 = vsel %vm436_vm11, 2147483648, %v1328_v12 }
 0x4d7   : > { %v442_v30 = vsub.s32 63, %v441_v28  ;;  %v447_v31 = vsel %vm224_vm0, %v1346_v29, 2147483648 }
 0x4d8   : > { %v449_v32 = vshra.s32 %v447_v31, 16  ;;  %v448_v35 = vand.u32 65535, %v447_v31 }
 0x4d9   : > { %v444_v33 = vsel %vm1747_vm12, %v442_v30, %v418_v17 }
 0x4da   : > { %v451_v34 = vcvt.s32.f32 %v449_v32  ;;  %v450_v37 = vcvt.s32.f32 %v448_v35 }
 0x4dc   : > { %452 = vmax.xlane.f32.xlu0 %v451_v34 }
 0x569   : > { %v453_v36 = vpop.xlane.xlu0 %452 }
 0x56a   : > { %vm454_vm13 = vcmp.eq.f32.partialorder %v451_v34, %v453_v36  ;;  %v459_v39 = vcvt.f32.s32 %v453_v36 }
 0x56b   : > { %v455_v38 = vsel %vm454_vm13, %v450_v37, -inf }
 0x56c   : > { %456 = vmax.xlane.f32.xlu1 %v455_v38  ;;  %v460_v41 = vshll.u32 %v459_v39, 16 }
 0x5f9   : > { %v457_v40 = vpop.xlane.xlu1 %456 }
 0x5fa   : > { %v458_v43 = vcvt.f32.s32 %v457_v40 }
 0x5fc   : > { %v1353_v45 = vadd.s32 %v460_v41, %v458_v43 }
 0x5fe   : > { %vm462_vm14 = vcmp.eq.s32.totalorder %v1346_v29, %v1353_v45  ;;  %v467_v46 = vand.u32 63, %v1353_v45 }
 0x5ff   : > { %v1362_v48 = vsel %vm462_vm14, 2147483648, %v1346_v29 }
 0x600   : > { %v468_v49 = vsub.s32 63, %v467_v46  ;;  %v473_v50 = vsel %vm224_vm0, %v1362_v48, 2147483648 }
 0x601   : > { %v475_v51 = vshra.s32 %v473_v50, 16  ;;  %v474_v54 = vand.u32 65535, %v473_v50 }
 0x602   : > { %v470_v52 = vsel %vm1745_vm15, %v468_v49, %v444_v33 }
 0x603   : > { %v477_v53 = vcvt.s32.f32 %v475_v51  ;;  %v476_v56 = vcvt.s32.f32 %v474_v54 }
 0x605   : > { %478 = vmax.xlane.f32.xlu0 %v477_v53 }
 0x692   : > { %v479_v55 = vpop.xlane.xlu0 %478 }
 0x693   : > { %vm480_vm1 = vcmp.eq.f32.partialorder %v477_v53, %v479_v55  ;;  %v485_v58 = vcvt.f32.s32 %v479_v55 }
 0x694   : > { %v481_v57 = vsel %vm480_vm1, %v476_v56, -inf }
 0x695   : > { %482 = vmax.xlane.f32.xlu1 %v481_v57  ;;  %v486_v62 = vshll.u32 %v485_v58, 16 }
 0x722   : > { %v483_v61 = vpop.xlane.xlu1 %482 }
 0x723   : > { %v484_v63 = vcvt.f32.s32 %v483_v61 }
 0x725   : > { %v1369_v0 = vadd.s32 %v486_v62, %v484_v63 }
 0x727   : > { %vm488_vm2 = vcmp.eq.s32.totalorder %v1362_v48, %v1369_v0  ;;  %v493_v1 = vand.u32 63, %v1369_v0 }
 0x728   : > { %v1378_v2 = vsel %vm488_vm2, 2147483648, %v1362_v48 }
 0x729   : > { %v494_v3 = vsub.s32 63, %v493_v1  ;;  %v499_v4 = vsel %vm224_vm0, %v1378_v2, 2147483648 }
 0x72a   : > { %v501_v5 = vshra.s32 %v499_v4, 16  ;;  %v500_v8 = vand.u32 65535, %v499_v4 }
 0x72b   : > { %v496_v6 = vsel %vm1743_vm3, %v494_v3, %v470_v52 }
 0x72c   : > { %v503_v7 = vcvt.s32.f32 %v501_v5  ;;  %v502_v11 = vcvt.s32.f32 %v500_v8 }
 0x72e   : > { %504 = vmax.xlane.f32.xlu0 %v503_v7 }
 0x7bb   : > { %v505_v10 = vpop.xlane.xlu0 %504 }
 0x7bc   : > { %vm506_vm4 = vcmp.eq.f32.partialorder %v503_v7, %v505_v10  ;;  %v511_v14 = vcvt.f32.s32 %v505_v10 }
 0x7bd   : > { %v507_v13 = vsel %vm506_vm4, %v502_v11, -inf  ;;  %vm1742_vm4 = vcmp.eq.s32.totalorder %v1295_v42, 6 }
 0x7be   : > { %508 = vmax.xlane.f32.xlu1 %v507_v13  ;;  %v512_v16 = vshll.u32 %v511_v14, 16 }
 0x84b   : > { %v509_v15 = vpop.xlane.xlu1 %508 }
 0x84c   : > { %v510_v17 = vcvt.f32.s32 %v509_v15 }
 0x84e   : > { %v1385_v18 = vadd.s32 %v512_v16, %v510_v17 }
 0x850   : > { %vm514_vm6 = vcmp.eq.s32.totalorder %v1378_v2, %v1385_v18  ;;  %v519_v19 = vand.u32 63, %v1385_v18 }
 0x851   : > { %v1394_v20 = vsel %vm514_vm6, 2147483648, %v1378_v2 }
 0x852   : > { %v520_v21 = vsub.s32 63, %v519_v19  ;;  %v525_v22 = vsel %vm224_vm0, %v1394_v20, 2147483648 }
 0x853   : > { %v527_v23 = vshra.s32 %v525_v22, 16  ;;  %v526_v26 = vand.u32 65535, %v525_v22 }
 0x854   : > { %v522_v24 = vsel %vm1741_vm10, %v520_v21, %v496_v6 }
 0x855   : > { %v529_v25 = vcvt.s32.f32 %v527_v23  ;;  %v528_v30 = vcvt.s32.f32 %v526_v26 }
 0x857   : > { %530 = vmax.xlane.f32.xlu0 %v529_v25 }
 0x8e4   : > { %v531_v28 = vpop.xlane.xlu0 %530 }
 0x8e5   : > { %vm532_vm13 = vcmp.eq.f32.partialorder %v529_v25, %v531_v28  ;;  %v537_v32 = vcvt.f32.s32 %v531_v28 }
 0x8e6   : > { %v533_v31 = vsel %vm532_vm13, %v528_v30, -inf }
 0x8e7   : > { %534 = vmax.xlane.f32.xlu1 %v533_v31  ;;  %v538_v34 = vshll.u32 %v537_v32, 16 }
 0x974   : > { %v535_v33 = vpop.xlane.xlu1 %534 }
 0x975   : > { %v536_v35 = vcvt.f32.s32 %v535_v33 }
 0x977   : > { %v1401_v36 = vadd.s32 %v538_v34, %v536_v35 }
 0x979   : > { %vm540_vm1 = vcmp.eq.s32.totalorder %v1394_v20, %v1401_v36  ;;  %v545_v37 = vand.u32 63, %v1401_v36 }
 0x97a   : > { %v1410_v38 = vsel %vm540_vm1, 2147483648, %v1394_v20  ;;  %v541_v47 = vsel %vm540_vm1, %v1297_v44, -1.0 }
 0x97b   : > { %v546_v39 = vsub.s32 63, %v545_v37  ;;  %v551_v40 = vsel %vm224_vm0, %v1410_v38, 2147483648  ;;  %v542_v59 = vsel %vm224_vm0, %v541_v47, -inf }
 0x97c   : > { %v553_v41 = vshra.s32 %v551_v40, 16  ;;  %v552_v49 = vand.u32 65535, %v551_v40 }
 0x97d   : > { %v548_v43 = vsel %vm1742_vm4, %v546_v39, %v522_v24 }
 0x97e   : > { %v555_v46 = vcvt.s32.f32 %v553_v41  ;;  %v554_v51 = vcvt.s32.f32 %v552_v49 }
 0x980   : > { %556 = vmax.xlane.f32.xlu0 %v555_v46 }
 0xa0d   : > { %v557_v50 = vpop.xlane.xlu0 %556 }
 0xa0e   : > { %vm558_vm13 = vcmp.eq.f32.partialorder %v555_v46, %v557_v50  ;;  %v563_v53 = vcvt.f32.s32 %v557_v50 }
 0xa0f   : > { %v559_v52 = vsel %vm558_vm13, %v554_v51, -inf  ;;  %vm1744_vm13 = vcmp.eq.s32.totalorder %v1295_v42, 7 }
 0xa10   : > { %560 = vmax.xlane.f32.xlu1 %v559_v52  ;;  %v564_v55 = vshll.u32 %v563_v53, 16 }
 0xa9d   : > { %v561_v54 = vpop.xlane.xlu1 %560 }
 0xa9e   : > { %v562_v56 = vcvt.f32.s32 %v561_v54 }
 0xaa0   : > { %v1417_v57 = vadd.s32 %v564_v55, %v562_v56 }
 0xaa2   : > { %vm566_vm10 = vcmp.eq.s32.totalorder %v1410_v38, %v1417_v57  ;;  %v571_v58 = vand.u32 63, %v1417_v57 }
 0xaa3   : > { %v1426_v61 = vsel %vm566_vm10, 2147483648, %v1410_v38  ;;  %v567_v60 = vsel %vm566_vm10, %v1297_v44, -1.0 }
 0xaa4   : > { %v572_v62 = vsub.s32 63, %v571_v58  ;;  %v577_v63 = vsel %vm224_vm0, %v1426_v61, 2147483648  ;;  %v568_v9 = vsel %vm224_vm0, %v567_v60, -inf }
 0xaa5   : > { %v579_v1 = vshra.s32 %v577_v63, 16  ;;  %v578_v5 = vand.u32 65535, %v577_v63 }
 0xaa6   : > { %v574_v3 = vsel %vm1744_vm13, %v572_v62, %v548_v43 }
 0xaa7   : > { %v581_v4 = vcvt.s32.f32 %v579_v1  ;;  %v580_v7 = vcvt.s32.f32 %v578_v5 }
 0xaa9   : > { %582 = vmax.xlane.f32.xlu0 %v581_v4 }
 0xb36   : > { %v583_v6 = vpop.xlane.xlu0 %582 }
 0xb37   : > { %vm584_vm4 = vcmp.eq.f32.partialorder %v581_v4, %v583_v6  ;;  %v589_v10 = vcvt.f32.s32 %v583_v6 }
 0xb38   : > { %v585_v8 = vsel %vm584_vm4, %v580_v7, -inf  ;;  %vm1746_vm4 = vcmp.eq.s32.totalorder %v1295_v42, 8 }
 0xb39   : > { %586 = vmax.xlane.f32.xlu1 %v585_v8  ;;  %v590_v13 = vshll.u32 %v589_v10, 16 }
 0xbc6   : > { %v587_v11 = vpop.xlane.xlu1 %586 }
 0xbc7   : > { %v588_v14 = vcvt.f32.s32 %v587_v11 }
 0xbc9   : > { %v1433_v15 = vadd.s32 %v590_v13, %v588_v14 }
 0xbcb   : > { %vm592_vm3 = vcmp.eq.s32.totalorder %v1426_v61, %v1433_v15  ;;  %v597_v16 = vand.u32 63, %v1433_v15 }
 0xbcc   : > { %v1442_v17 = vsel %vm592_vm3, 2147483648, %v1426_v61  ;;  %v593_v12 = vsel %vm592_vm3, %v1297_v44, -1.0 }
 0xbcd   : > { %v598_v19 = vsub.s32 63, %v597_v16  ;;  %v603_v21 = vsel %vm224_vm0, %v1442_v17, 2147483648  ;;  %v594_v27 = vsel %vm224_vm0, %v593_v12, -inf }
 0xbce   : > { %v605_v22 = vshra.s32 %v603_v21, 16  ;;  %v604_v25 = vand.u32 65535, %v603_v21 }
 0xbcf   : > { %v600_v23 = vsel %vm1746_vm4, %v598_v19, %v574_v3 }
 0xbd0   : > { %v607_v24 = vcvt.s32.f32 %v605_v22  ;;  %v606_v28 = vcvt.s32.f32 %v604_v25 }
 0xbd2   : > { %608 = vmax.xlane.f32.xlu0 %v607_v24 }
 0xc5f   : > { %v609_v26 = vpop.xlane.xlu0 %608 }
 0xc60   : > { %vm610_vm13 = vcmp.eq.f32.partialorder %v607_v24, %v609_v26  ;;  %v615_v31 = vcvt.f32.s32 %v609_v26 }
 0xc61   : > { %v611_v30 = vsel %vm610_vm13, %v606_v28, -inf  ;;  %vm1748_vm13 = vcmp.eq.s32.totalorder %v1295_v42, 9 }
 0xc62   : > { %612 = vmax.xlane.f32.xlu1 %v611_v30  ;;  %v616_v33 = vshll.u32 %v615_v31, 16 }
 0xcef   : > { %v613_v32 = vpop.xlane.xlu1 %612 }
 0xcf0   : > { %v614_v34 = vcvt.f32.s32 %v613_v32 }
 0xcf2   : > { %v1449_v35 = vadd.s32 %v616_v33, %v614_v34 }
 0xcf4   : > { %vm618_vm15 = vcmp.eq.s32.totalorder %v1442_v17, %v1449_v35  ;;  %v623_v37 = vand.u32 63, %v1449_v35 }
 0xcf5   : > { %v1458_v39 = vsel %vm618_vm15, 2147483648, %v1442_v17  ;;  %v619_v29 = vsel %vm618_vm15, %v1297_v44, -1.0 }
 0xcf6   : > { %v624_v40 = vsub.s32 63, %v623_v37  ;;  %v629_v41 = vsel %vm224_vm0, %v1458_v39, 2147483648  ;;  %v620_v45 = vsel %vm224_vm0, %v619_v29, -inf }
 0xcf7   : > { %v631_v43 = vshra.s32 %v629_v41, 16  ;;  %v630_v50 = vand.u32 65535, %v629_v41 }
 0xcf8   : > { %v626_v46 = vsel %vm1748_vm13, %v624_v40, %v600_v23 }
 0xcf9   : > { %v633_v49 = vcvt.s32.f32 %v631_v43  ;;  %v632_v52 = vcvt.s32.f32 %v630_v50 }
 0xcfb   : > { %634 = vmax.xlane.f32.xlu0 %v633_v49 }
 0xd88   : > { %v635_v51 = vpop.xlane.xlu0 %634 }
 0xd89   : > { %vm636_vm4 = vcmp.eq.f32.partialorder %v633_v49, %v635_v51  ;;  %v641_v54 = vcvt.f32.s32 %v635_v51 }
 0xd8a   : > { %v637_v53 = vsel %vm636_vm4, %v632_v52, -inf  ;;  %vm1750_vm4 = vcmp.eq.s32.totalorder %v1295_v42, 10 }
 0xd8b   : > { %638 = vmax.xlane.f32.xlu1 %v637_v53  ;;  %v642_v56 = vshll.u32 %v641_v54, 16 }
 0xe18   : > { %v639_v55 = vpop.xlane.xlu1 %638 }
 0xe19   : > { %v640_v58 = vcvt.f32.s32 %v639_v55 }
 0xe1b   : > { %v1465_v62 = vadd.s32 %v642_v56, %v640_v58 }
 0xe1d   : > { %vm644_vm12 = vcmp.eq.s32.totalorder %v1458_v39, %v1465_v62  ;;  %v649_v63 = vand.u32 63, %v1465_v62 }
 0xe1e   : > { %v1474_v1 = vsel %vm644_vm12, 2147483648, %v1458_v39  ;;  %v645_v48 = vsel %vm644_vm12, %v1297_v44, -1.0  ;;  %vm784_vm12 = vcmask 130048  }
 0xe1f   : > { %v650_v3 = vsub.s32 63, %v649_v63  ;;  %v655_v4 = vsel %vm224_vm0, %v1474_v1, 2147483648  ;;  %v646_v0 = vsel %vm224_vm0, %v645_v48, -inf }
 0xe20   : > { %v657_v5 = vshra.s32 %v655_v4, 16  ;;  %v656_v8 = vand.u32 65535, %v655_v4 }
 0xe21   : > { %v652_v6 = vsel %vm1750_vm4, %v650_v3, %v626_v46 }
 0xe22   : > { %v659_v7 = vcvt.s32.f32 %v657_v5  ;;  %v658_v11 = vcvt.s32.f32 %v656_v8 }
 0xe24   : > { %660 = vmax.xlane.f32.xlu0 %v659_v7 }
 0xeb1   : > { %v661_v10 = vpop.xlane.xlu0 %660 }
 0xeb2   : > { %vm662_vm13 = vcmp.eq.f32.partialorder %v659_v7, %v661_v10  ;;  %v667_v14 = vcvt.f32.s32 %v661_v10 }
 0xeb3   : > { %v663_v13 = vsel %vm662_vm13, %v658_v11, -inf  ;;  %vm1752_vm13 = vcmp.eq.s32.totalorder %v1295_v42, 11 }
 0xeb4   : > { %664 = vmax.xlane.f32.xlu1 %v663_v13  ;;  %v668_v19 = vshll.u32 %v667_v14, 16 }
 0xf41   : > { %v665_v16 = vpop.xlane.xlu1 %664 }
 0xf42   : > { %v666_v21 = vcvt.f32.s32 %v665_v16 }
 0xf44   : > { %v1481_v22 = vadd.s32 %v668_v19, %v666_v21 }
 0xf46   : > { %vm1753_vm9 = vcmp.eq.s32.totalorder %v1474_v1, %v1481_v22  ;;  %v675_v23 = vand.u32 63, %v1481_v22 }
 0xf47   : > { %v1490_v24 = vsel %vm1753_vm9, 2147483648, %v1474_v1 }
 0xf48   : > { %v676_v25 = vsub.s32 63, %v675_v23  ;;  %v681_v26 = vsel %vm224_vm0, %v1490_v24, 2147483648 }
 0xf49   : > { %v683_v28 = vshra.s32 %v681_v26, 16  ;;  %v682_v32 = vand.u32 65535, %v681_v26 }
 0xf4a   : > { %v678_v30 = vsel %vm1752_vm13, %v676_v25, %v652_v6 }
 0xf4b   : > { %v685_v31 = vcvt.s32.f32 %v683_v28  ;;  %v684_v34 = vcvt.s32.f32 %v682_v32 }
 0xf4d   : > { %686 = vmax.xlane.f32.xlu0 %v685_v31 }
 0xfda   : > { %v687_v33 = vpop.xlane.xlu0 %686 }
 0xfdb   : > { %vm688_vm4 = vcmp.eq.f32.partialorder %v685_v31, %v687_v33  ;;  %v693_v40 = vcvt.f32.s32 %v687_v33 }
 0xfdc   : > { %v689_v37 = vsel %vm688_vm4, %v684_v34, -inf  ;;  %vm1754_vm4 = vcmp.eq.s32.totalorder %v1295_v42, 12 }
 0xfdd   : > { %690 = vmax.xlane.f32.xlu1 %v689_v37  ;;  %v694_v43 = vshll.u32 %v693_v40, 16 }
0x106a   : > { %v691_v41 = vpop.xlane.xlu1 %690 }
0x106b   : > { %v692_v46 = vcvt.f32.s32 %v691_v41 }
0x106d   : > { %v1497_v49 = vadd.s32 %v694_v43, %v692_v46 }
0x106f   : > { %vm696_vm8 = vcmp.eq.s32.totalorder %v1490_v24, %v1497_v49  ;;  %v701_v50 = vand.u32 63, %v1497_v49 }
0x1070   : > { %v1506_v51 = vsel %vm696_vm8, 2147483648, %v1490_v24  ;;  %v697_v20 = vsel %vm696_vm8, %v1297_v44, -1.0  ;;  %v411_v24 = vsel %vm410_vm7, %v1297_v44, -1.0  ;;  %vm1761_vm7 = vcmp.eq.s32.totalorder %v1474_v1, %v1481_v22 }
0x1071   : > { %v702_v52 = vsub.s32 63, %v701_v50  ;;  %v707_v53 = vsel %vm224_vm0, %v1506_v51, 2147483648  ;;  %v698_v36 = vsel %vm224_vm0, %v697_v20, -inf  ;;  %v412_v49 = vsel %vm224_vm0, %v411_v24, -inf }
0x1072   : > { %v709_v54 = vshra.s32 %v707_v53, 16  ;;  %v708_v58 = vand.u32 65535, %v707_v53  ;;  %v671_v2 = vsel %vm1761_vm7, %v1297_v44, -1.0 }
0x1073   : > { %v704_v55 = vsel %vm1754_vm4, %v702_v52, %v678_v30  ;;  %vm1756_vm4 = vcmp.eq.s32.totalorder %v1295_v42, 13  ;;  %v672_v18 = vsel %vm224_vm0, %v671_v2, -inf }
0x1074   : > { %v711_v56 = vcvt.s32.f32 %v709_v54  ;;  %v710_v3 = vcvt.s32.f32 %v708_v58  ;;  %v385_v54 = vsel %vm384_vm5, %v1297_v44, -1.0 }
0x1076   : > { %712 = vmax.xlane.f32.xlu0 %v711_v56 }
0x1103   : > { %v713_v63 = vpop.xlane.xlu0 %712 }
0x1104   : > { %vm714_vm13 = vcmp.eq.f32.partialorder %v711_v56, %v713_v63  ;;  %v719_v5 = vcvt.f32.s32 %v713_v63  ;;  %v437_v56 = vsel %vm436_vm11, %v1297_v44, -1.0  ;;  %v489_v63 = vsel %vm488_vm2, %v1297_v44, -1.0 }
0x1105   : > { %v715_v4 = vsel %vm714_vm13, %v710_v3, -inf  ;;  %v438_v58 = vsel %vm224_vm0, %v437_v56, -inf  ;;  %v490_v3 = vsel %vm224_vm0, %v489_v63, -inf  ;;  %vm781_vm11 = vcmp.eq.s32.totalorder %v1295_v42, 15 }
0x1106   : > { %716 = vmax.xlane.f32.xlu1 %v715_v4  ;;  %v720_v7 = vshll.u32 %v719_v5, 16 }
0x1193   : > { %v717_v6 = vpop.xlane.xlu1 %716 }
0x1194   : > { %v718_v8 = vcvt.f32.s32 %v717_v6  ;;  %v463_v6 = vsel %vm462_vm14, %v1297_v44, -1.0 }
0x1196   : > { %v1513_v10 = vadd.s32 %v720_v7, %v718_v8  ;;  %v464_v7 = vsel %vm224_vm0, %v463_v6, -inf  ;;  %v515_v8 = vsel %vm514_vm6, %v1297_v44, -1.0 }
0x1198   : > { %vm1755_vm9 = vcmp.eq.s32.totalorder %v1506_v51, %v1513_v10  ;;  %v727_v11 = vand.u32 63, %v1513_v10  ;;  %vm1762_vm8 = vcmp.eq.s32.totalorder %v1506_v51, %v1513_v10 }
0x1199   : > { %v732_v13 = vsel %vm1755_vm9, 2147483648, %v1506_v51  ;;  %v723_v38 = vsel %vm1762_vm8, %v1297_v44, -1.0 }
0x119a   : > { %v728_v14 = vsub.s32 63, %v727_v11  ;;  %v733_v16 = vsel %vm224_vm0, %v732_v13, 2147483648  ;;  %v516_v11 = vsel %vm224_vm0, %v515_v8, -inf  ;;  %v724_v57 = vsel %vm224_vm0, %v723_v38, -inf }
0x119b   : > { %v735_v19 = vshra.s32 %v733_v16, 16  ;;  %v734_v25 = vand.u32 65535, %v733_v16 }
0x119c   : > { %v730_v21 = vsel %vm1756_vm4, %v728_v14, %v704_v55  ;;  %vm755_vm4 = vcmp.eq.s32.totalorder %v1295_v42, 14  ;;  %v386_v55 = vsel %vm224_vm0, %v385_v54, -inf }
0x119d   : > { %v737_v23 = vcvt.s32.f32 %v735_v19  ;;  %v736_v28 = vcvt.s32.f32 %v734_v25 }
0x119f   : > { %738 = vmax.xlane.f32.xlu0 %v737_v23 }
0x122c   : > { %v739_v26 = vpop.xlane.xlu0 %738 }
0x122d   : > { %vm740_vm13 = vcmp.eq.f32.partialorder %v737_v23, %v739_v26  ;;  %v745_v31 = vcvt.f32.s32 %v739_v26 }
0x122e   : > { %v741_v30 = vsel %vm740_vm13, %v736_v28, -inf }
0x122f   : > { %742 = vmax.xlane.f32.xlu1 %v741_v30  ;;  %v746_v33 = vshll.u32 %v745_v31, 16 }
0x12bc   : > { %v743_v32 = vpop.xlane.xlu1 %742 }
0x12bd   : > { %v744_v34 = vcvt.f32.s32 %v743_v32 }
0x12bf   : > { %v747_v37 = vadd.s32 %v746_v33, %v744_v34 }
0x12c1   : > { %vm748_vm9 = vcmp.eq.s32.totalorder %v732_v13, %v747_v37  ;;  %v753_v40 = vand.u32 63, %v747_v37 }
0x12c2   : > { %v1527_v41 = vsel %vm748_vm9, 2147483648, %v732_v13  ;;  %v749_v61 = vsel %vm748_vm9, %v1297_v44, -1.0 }
0x12c3   : > { %v754_v43 = vsub.s32 63, %v753_v40  ;;  %v759_v46 = vsel %vm224_vm0, %v1527_v41, 2147483648  ;;  %v750_v15 = vsel %vm224_vm0, %v749_v61, -inf }
0x12c4   : > { %v761_v50 = vshra.s32 %v759_v46, 16  ;;  %v760_v4 = vand.u32 65535, %v759_v46 }
0x12c5   : > { %v1534_v52 = vsel %vm755_vm4, %v754_v43, %v730_v21 }
0x12c6   : > { %v763_v53 = vcvt.s32.f32 %v761_v50  ;;  %v762_v62 = vcvt.s32.f32 %v760_v4 }
0x12c8   : > { %764 = vmax.xlane.f32.xlu0 %v763_v53 }
0x12cc   : > { %387 = vmax.xlane.f32.xlu0 %v386_v55 }
0x12d0   : > { %439 = vmax.xlane.f32.xlu0 %v438_v58 }
0x12d4   : > { %491 = vmax.xlane.f32.xlu0 %v490_v3 }
0x12d8   : > { %543 = vmax.xlane.f32.xlu0 %v542_v59 }
0x12dc   : > { %595 = vmax.xlane.f32.xlu0 %v594_v27 }
0x12e0   : > { %647 = vmax.xlane.f32.xlu0 %v646_v0 }
0x12e4   : > { %699 = vmax.xlane.f32.xlu0 %v698_v36 }
0x12e8   : > { %751 = vmax.xlane.f32.xlu0 %v750_v15 }
0x1355   : > { %v765_v39 = vpop.xlane.xlu0 %764 }
0x1356   : > { %vm766_vm5 = vcmp.eq.f32.partialorder %v763_v53, %v765_v39  ;;  %v771_v17 = vcvt.f32.s32 %v765_v39 }
0x1357   : > { %v767_v5 = vsel %vm766_vm5, %v762_v62, -inf }
0x1358   : > { %768 = vmax.xlane.f32.xlu1 %v767_v5  ;;  %v772_v13 = vshll.u32 %v771_v17, 16 }
0x135c   : > { %413 = vmax.xlane.f32.xlu1 %v412_v49 }
0x1360   : > { %465 = vmax.xlane.f32.xlu1 %v464_v7 }
0x1364   : > { %517 = vmax.xlane.f32.xlu1 %v516_v11 }
0x1368   : > { %569 = vmax.xlane.f32.xlu1 %v568_v9 }
0x136c   : > { %621 = vmax.xlane.f32.xlu1 %v620_v45 }
0x1370   : > { %673 = vmax.xlane.f32.xlu1 %v672_v18 }
0x1374   : > { %725 = vmax.xlane.f32.xlu1 %v724_v57 }
0x13e5   : > { %v769_v35 = vpop.xlane.xlu1 %768 }
0x13e6   : > { %v770_v14 = vcvt.f32.s32 %v769_v35 }
0x13e8   : > { %v773_v1 = vadd.s32 %v772_v13, %v770_v14 }
0x13ea   : > { %v779_v22 = vand.u32 63, %v773_v1  ;;  %vm774_vm9 = vcmp.eq.s32.totalorder %v1527_v41, %v773_v1 }
0x13eb   : > { %v775_v51 = vsel %vm774_vm9, %v1297_v44, -1.0 }
0x13ec   : > { %v780_v10 = vsub.s32 63, %v779_v22  ;;  %v776_v16 = vsel %vm224_vm0, %v775_v51, -inf }
0x13ed   : > { %777 = vmax.xlane.f32.xlu1 %v776_v16 }
0x13ee   : > { %v782_v19 = vsel %vm781_vm11, %v780_v10, %v1534_v52 }
0x13ef   : > { %785 = vst.msk [vmem:[%s200_s8] sm:$0xff] %vm784_vm12, %v782_v19 }
0x13f0   : > { %1089 = shalt.err (!%p1086_p5)
}
0x13f1   : > { %s1090_s29 = scalar_lea.hbm %s1629_s18, 128  ;;  %s1094_s5 = scalar_lea.hbm %s1739_s2, 256 }
0x13f2   : > { %p1091_p6 = scmp.ne.s32.totalorder %s1629_s18, %s1090_s29  ;;  %p1095_p10 = scmp.lt.u32.totalorder %s1629_s18, %s1739_s2 }
0x13f3   : > { %p1096_p11 = scmp.lt.u32.totalorder %s1094_s5, %s1090_s29  ;;  %p1098_p13 = scmp.lt.u32.totalorder %s1090_s29, %s1629_s18 }
0x13f4   : > { %p1092_p7 = pnand %p1091_p6, %p1253_p4 }
0x13f5   : > { %p1097_p12 = por %p1096_p11, %p1095_p10 }
0x13f6   : > { %p1093_p9 = pneg %p1092_p7 }
0x13f7   : > { %p1099_p0 = por %p1098_p13, %p1097_p12 }
0x13f9   : > { %p1100_p1 = pnand %p1099_p0, %p1093_p9 }
0x13fb   : > { %1103 = shalt.err (!%p1100_p1)
}
0x13fc   : > { %1009 = dma.vmem_to_hbm [thread:$0]  (%p1253_p4), %s807_s19, 128, %s1629_s18, %s788_s21   ;;  %v388_v44 = vpop.xlane.xlu0 %387  ;;  %v414_v21 = vpop.xlane.xlu1 %413  ;;  %vm1763_vm0 = vcmp.eq.s32.totalorder %v1295_v42, 0  ;;  %vm1764_vm14 = vcmp.eq.s32.totalorder %v1295_v42, 1  ;;  %vm1765_vm15 = vcmp.eq.s32.totalorder %v1295_v42, 2  ;;  %vm1766_vm2 = vcmp.eq.s32.totalorder %v1295_v42, 3 }
0x13fd   : > { %v393_v30 = vsel %vm1763_vm0, %v388_v44, 0.0  ;;  %vm1767_vm3 = vcmp.eq.s32.totalorder %v1295_v42, 4  ;;  %vm1768_vm6 = vcmp.eq.s32.totalorder %v1295_v42, 5  ;;  %vm1769_vm10 = vcmp.eq.s32.totalorder %v1295_v42, 6  ;;  %s207_s11 = scalar_lea.vmem [#allocation5], %s945_s7  ;;  %s1686_s23 = scalar_lea.hbm %s1740_s3, %s960_s9 }
0x13fe   : > { %v419_v31 = vsel %vm1764_vm14, %v414_v21, %v393_v30  ;;  %vm1770_vm1 = vcmp.eq.s32.totalorder %v1295_v42, 7  ;;  %vm1771_vm13 = vcmp.eq.s32.totalorder %v1295_v42, 8  ;;  %vm1772_vm5 = vcmp.eq.s32.totalorder %v1295_v42, 9  ;;  %s819_s18 = sshll.u32 %s207_s11, 4  ;;  %s793_s7 = scalar_lea.sflag [#allocation6], %s1610_s6  ;;  %s1688_s18 = int_to_ptr.vmem [resolvable:$true] %s819_s18 }
0x13ff   : > { %vm1773_vm7 = vcmp.eq.s32.totalorder %v1295_v42, 10  ;;  %vm1774_vm8 = vcmp.eq.s32.totalorder %v1295_v42, 11  ;;  %vm1775_vm9 = vcmp.eq.s32.totalorder %v1295_v42, 12  ;;  %vm1776_vm0 = vcmp.eq.s32.totalorder %v1295_v42, 13  ;;  %s1104_s26 = scalar_lea.vmem %s1688_s18, 128  ;;  %s1192_s15 = smov [#allocation5]  }
0x1400   : > { %v440_v23 = vpop.xlane.xlu0 %439  ;;  %v466_v25 = vpop.xlane.xlu1 %465  ;;  %p1105_p2 = scmp.ne.s32.totalorder %s1688_s18, %s1104_s26  ;;  %s1108_s27 = sshll.u32 %s1192_s15, 4  ;;  %s1109_s27 = int_to_ptr.vmem [resolvable:$false] %s1108_s27 }
0x1401   : > { %v445_v33 = vsel %vm1765_vm15, %v440_v23, %v419_v31  ;;  %s1110_s9 = scalar_lea.vmem %s1109_s27, 256  ;;  %p1111_p6 = scmp.lt.s32.totalorder %s1688_s18, %s1109_s27 }
0x1402   : > { %v471_v37 = vsel %vm1766_vm2, %v466_v25, %v445_v33  ;;  %p1106_p3 = pnand %p1105_p2, %p1253_p4  ;;  %p1112_p7 = scmp.lt.s32.totalorder %s1110_s9, %s1104_s26 }
0x1404   : > { %v492_v26 = vpop.xlane.xlu0 %491  ;;  %v518_v28 = vpop.xlane.xlu1 %517  ;;  %p1107_p5 = pneg %p1106_p3  ;;  %p1113_p9 = por %p1112_p7, %p1111_p6 }
0x1405   : > { %v497_v40 = vsel %vm1767_vm3, %v492_v26, %v471_v37 }
0x1406   : > { %v523_v43 = vsel %vm1768_vm6, %v518_v28, %v497_v40  ;;  %p1114_p10 = pnand %p1113_p9, %p1107_p5 }
0x1408   : > { %v544_v32 = vpop.xlane.xlu0 %543  ;;  %v570_v34 = vpop.xlane.xlu1 %569 }
0x1409   : > { %v549_v50 = vsel %vm1769_vm10, %v544_v32, %v523_v43 }
0x140a   : > { %v575_v52 = vsel %vm1770_vm1, %v570_v34, %v549_v50 }
0x140c   : > { %v596_v41 = vpop.xlane.xlu0 %595  ;;  %v622_v46 = vpop.xlane.xlu1 %621 }
0x140d   : > { %v601_v54 = vsel %vm1771_vm13, %v596_v41, %v575_v52 }
0x140e   : > { %v627_v56 = vsel %vm1772_vm5, %v622_v46, %v601_v54 }
0x1410   : > { %v648_v53 = vpop.xlane.xlu0 %647  ;;  %v674_v55 = vpop.xlane.xlu1 %673 }
0x1411   : > { %v653_v58 = vsel %vm1773_vm7, %v648_v53, %v627_v56 }
0x1412   : > { %v679_v3 = vsel %vm1774_vm8, %v674_v55, %v653_v58 }
0x1414   : > { %v700_v63 = vpop.xlane.xlu0 %699  ;;  %v726_v47 = vpop.xlane.xlu1 %725 }
0x1415   : > { %v705_v59 = vsel %vm1775_vm9, %v700_v63, %v679_v3 }
0x1416   : > { %v731_v12 = vsel %vm1776_vm0, %v726_v47, %v705_v59 }
0x1418   : > { %v752_v27 = vpop.xlane.xlu0 %751 }
0x1419   : > { %v757_v0 = vsel %vm755_vm4, %v752_v27, %v731_v12 }
0x147a   : > { %v778_v48 = vpop.xlane.xlu1 %777 }
0x147b   : > { %v783_v20 = vsel %vm781_vm11, %v778_v48, %v757_v0 }
0x147c   : > { %786 = vst.msk [vmem:[%s207_s11] sm:$0xff] %vm784_vm12, %v783_v20 }
0x147d   : > { %1117 = shalt.err (!%p1114_p10)
}
0x147e   : > { %s1118_s6 = scalar_lea.hbm %s1686_s23, 128  ;;  %s1122_s30 = scalar_lea.hbm %s1740_s3, 256 }
0x147f   : > { %p1119_p11 = scmp.ne.s32.totalorder %s1686_s23, %s1118_s6  ;;  %p1123_p0 = scmp.lt.u32.totalorder %s1686_s23, %s1740_s3 }
0x1480   : > { %p1124_p1 = scmp.lt.u32.totalorder %s1122_s30, %s1118_s6  ;;  %p1126_p3 = scmp.lt.u32.totalorder %s1118_s6, %s1686_s23 }
0x1481   : > { %p1120_p12 = pnand %p1119_p11, %p1253_p4 }
0x1482   : > { %p1125_p2 = por %p1124_p1, %p1123_p0 }
0x1483   : > { %p1121_p13 = pneg %p1120_p12 }
0x1484   : > { %p1127_p5 = por %p1126_p3, %p1125_p2 }
0x1486   : > { %p1128_p6 = pnand %p1127_p5, %p1121_p13 }
0x1488   : > { %1131 = shalt.err (!%p1128_p6)
}
0x1489   : > { %1010 = dma.vmem_to_hbm [thread:$0]  (%p1253_p4), %s1688_s18, 128, %s1686_s23, %s793_s7  }
0x148a PF: > { %p1020_p7 = scmp.ge.s32.totalorder %s1186_s17, 2  ;;  %s831_s8 = sand.u32 1, %s1166_s12  }
0x148b   : > { %s832_s10 = scalar_lea.sflag [#allocation4], %s831_s8 }
0x148c   : > { %p1014_p9 = pnand %p1020_p7, %p1260_p8 }
0x148e   : > { %1157 = dma.done.wait (!%p1014_p9), %s832_s10, 128  }
0x148f   : > { %1159 = vsyncadd (!%p1014_p9), %s832_s10, 4294967168  ;;  %s841_s11 = scalar_lea.sflag [#allocation6], %s831_s8 }
0x1490   : > { %1161 = dma.done.wait (!%p1014_p9), %s841_s11, 128  }
0x1491   : > { %1163 = vsyncadd (!%p1014_p9), %s841_s11, 4294967168  ;;  %s20_s17 = sadd.s32 1, %s1186_s17   ;;  %s1777_s12 = smov %s1170_s13 }
0x1492   : > { %p17_p10 = scmp.ge.s32.totalorder %s20_s17, 4   ;;  %s1778_s13 = smov %s1174_s14 }
0x1493   : > { %s1779_s14 = smov %s1266_s25  ;;  %s1780_s15 = smov %s1182_s16 }
0x1494   : > { %s1781_s16 = smov %s1783_s20  ;;  %19 = sbr.rel (!%p17_p10) target bundleno = 6 (0x6), region = 91 }
0x149b   :  { %846 = vsyncpa [#allocation4], 1 }
0x149c   :  { %848 = vsyncpa [#allocation4 + $0x1], 1 }
0x149d   :  { %849 = vsyncpa [#allocation6], 1 }
0x149e   :  { %851 = vsyncpa [#allocation6 + $0x1], 1 }

</bundles_post_ra>
